<compile_context>
chip_gen: v6e
topology: v6e:2x2x1
jax: 0.10.0
libtpu: 0.0.40
codegen_flags: <defaults>
</compile_context>

<pallas_src>
import functools

import jax
import jax.numpy as jnp
import numpy as np
from jax.experimental import pallas as pl
from jax.experimental.pallas import tpu as pltpu


def _round_up(x, m):
    return (x + m - 1) // m * m


def _vmem_capacity_bytes():
    """Generation-aware VMEM capacity (128 MiB v5e/v6e, 64 MiB per TC on v7x)."""
    try:
        return int(pltpu.get_tpu_info().vmem_capacity_bytes)
    except Exception:  # conservative fallback (v7x per-TC size)
        return 64 << 20


# ----------------------------------------------------------------------------
# Kernel
# ----------------------------------------------------------------------------
def _classifier_kernel(add_single_words, normalize_embeddings, compute_dtype,
                       *refs):
    if add_single_words:
        (w1_ref, w2_ref, mwa_ref, mwb_ref, mb_ref,
         hw1_ref, hw2_ref, hwc_ref, hb_ref, ow_ref, ob_ref, out_ref) = refs
    else:
        (w1_ref, w2_ref, mwa_ref, mwb_ref, mb_ref,
         hwc_ref, hb_ref, ow_ref, ob_ref, out_ref) = refs

    # Activation tiles arrive already in compute_dtype (cast in the wrapper).
    w1 = w1_ref[...]                               # (TB, D)
    w2 = w2_ref[...]                               # (TB, D)

    # compose(): Linear(2D -> D) on cat(w1, w2), written as two split-K dots
    # summed (same MXU FLOPs as the fused K=2D dot, no concat needed).
    composed = (jnp.dot(w1, mwa_ref[...], preferred_element_type=jnp.float32)
                + jnp.dot(w2, mwb_ref[...], preferred_element_type=jnp.float32)
                + mb_ref[...])                     # (TB, Dp) f32

    # dropout -> identity (inference semantics)

    if normalize_embeddings:
        # F.normalize(x, p=2, dim=1) == x / max(||x||_2, 1e-12); single EUP rsqrt.
        sumsq = jnp.sum(composed * composed, axis=-1, keepdims=True)
        composed = composed * jax.lax.rsqrt(jnp.maximum(sumsq, 1e-24))

    # hidden layer: Linear(forward_dim -> H) on [w1 ; w2 ; composed]
    # (or composed only), cat folded into split-and-summed matmuls.
    h = (jnp.dot(composed.astype(compute_dtype), hwc_ref[...],
                 preferred_element_type=jnp.float32) + hb_ref[...])
    if add_single_words:
        h = h + jnp.dot(w1, hw1_ref[...], preferred_element_type=jnp.float32)
        h = h + jnp.dot(w2, hw2_ref[...], preferred_element_type=jnp.float32)
    h = jnp.maximum(h, 0.0)                        # ReLU

    # dropout -> identity (inference semantics)

    # output layer: Linear(H -> L), lane-dense padded store.
    out_ref[...] = (jnp.dot(h.astype(compute_dtype), ow_ref[...],
                            preferred_element_type=jnp.float32)
                    + ob_ref[...]).astype(out_ref.dtype)


# ----------------------------------------------------------------------------
# One-time weight packing (hoisted out of the per-call path)
# ----------------------------------------------------------------------------
def pack_params(params, *, add_single_words, normalize_embeddings,
                compute_dtype=jnp.bfloat16):
    """Transpose / lane-pad / cast the torch-convention weights once.

    params (torch nn.Linear convention, weight = (out_features, in_features)):
        matrix_w: (D, 2D), matrix_b: (D,)
        hidden_w: (H, forward_dim), hidden_b: (H,)
        out_w:    (L, H), out_b: (L,)
    """
    D = params["matrix_b"].shape[0]
    H, forward_dim = params["hidden_w"].shape
    L = params["out_w"].shape[0]
    Dp, Hp, Lp = _round_up(D, 128), _round_up(H, 128), _round_up(L, 128)
    wdt = jnp.dtype(compute_dtype)

    mw = params["matrix_w"]                        # (D, 2D)
    weights = {
        "mwT_a": jnp.zeros((D, Dp), wdt).at[:, :D].set(mw[:, :D].T.astype(wdt)),
        "mwT_b": jnp.zeros((D, Dp), wdt).at[:, :D].set(mw[:, D:].T.astype(wdt)),
        "mb": jnp.zeros((1, Dp), jnp.float32).at[:, :D].set(
            params["matrix_b"][None, :]),
    }

    hw = params["hidden_w"]                        # (H, forward_dim)
    if add_single_words:
        assert forward_dim == 3 * D
        weights["hw_w1"] = jnp.zeros((D, Hp), wdt).at[:, :H].set(
            hw[:, :D].T.astype(wdt))
        weights["hw_w2"] = jnp.zeros((D, Hp), wdt).at[:, :H].set(
            hw[:, D:2 * D].T.astype(wdt))
        hw_c = hw[:, 2 * D:]
    else:
        assert forward_dim == D
        hw_c = hw
    weights["hw_c"] = jnp.zeros((Dp, Hp), wdt).at[:D, :H].set(hw_c.T.astype(wdt))
    weights["hb"] = jnp.zeros((1, Hp), jnp.float32).at[:, :H].set(
        params["hidden_b"][None, :])
    weights["ow"] = jnp.zeros((Hp, Lp), wdt).at[:H, :L].set(
        params["out_w"].T.astype(wdt))
    weights["ob"] = jnp.zeros((1, Lp), jnp.float32).at[:, :L].set(
        params["out_b"][None, :])

    return {
        "weights": weights,
        "add_single_words": add_single_words,
        "normalize_embeddings": normalize_embeddings,
        "compute_dtype": wdt,
        "dims": (D, H, L, Dp, Hp, Lp),
    }


# ----------------------------------------------------------------------------
# Forward wrapper
# ----------------------------------------------------------------------------
def matrix_transfer_classifier_forward(w1, w2, packed, *, block_b=512):
    """MatrixTransferClassifier forward (dropout = identity) in one Pallas kernel."""
    add_single_words = packed["add_single_words"]
    normalize_embeddings = packed["normalize_embeddings"]
    wdt = packed["compute_dtype"]
    D, H, L, Dp, Hp, Lp = packed["dims"]
    weights = packed["weights"]

    B, Din = w1.shape
    assert Din == D and w2.shape == (B, D)

    in_item = jnp.dtype(wdt).itemsize
    sub = 16 if in_item < 4 else 8                 # bf16 sublane pack is 16 rows

    names = ["mwT_a", "mwT_b", "mb"]
    if add_single_words:
        names += ["hw_w1", "hw_w2"]
    names += ["hw_c", "hb", "ow", "ob"]
    w_args = [weights[n] for n in names]
    weight_bytes = sum(int(a.nbytes) for a in w_args)   # single-buffered weights

    # --- derive the batch tile from the generation-aware VMEM budget --------
    cap = _vmem_capacity_bytes()
    budget = int(0.8 * cap)
    act_bytes_per_row = 2 * (2 * D * in_item + Lp * 4)  # double-buffered in/out
    TB = _round_up(max(1, min(block_b, B)), sub)
    while TB > sub and weight_bytes + TB * act_bytes_per_row > budget:
        TB = max(sub, _round_up(TB // 2, sub))
    # Keep >= 2 grid tiles when the batch allows, so the "parallel" batch axis
    # feeds both TensorCores on v7x (harmless elsewhere).
    if pl.cdiv(B, TB) == 1 and B > sub:
        TB = max(sub, _round_up(pl.cdiv(B, 2), sub))
    n_tiles = pl.cdiv(B, TB)
    Bp = n_tiles * TB

    # --- activation prep: cast once in the wrapper (halves the kernel's
    #     dominant HBM stream); pad the batch only if actually needed --------
    def _prep(a):
        if a.dtype != wdt:
            a = a.astype(wdt)
        if Bp != B:
            a = jnp.zeros((Bp, D), wdt).at[:B, :].set(a)
        return a
    w1p, w2p = _prep(w1), _prep(w2)

    kernel = functools.partial(_classifier_kernel, add_single_words,
                               normalize_embeddings, wdt)

    def _run(use_buffered):
        wb = weight_bytes if use_buffered else 2 * weight_bytes
        vmem_limit = int(min(cap, max((wb + TB * act_bytes_per_row) * 5 // 4,
                                      32 << 20)))

        def const_spec(arr):
            n = arr.ndim
            kwargs = {}
            if use_buffered:
                # Weights never change across grid steps -> 1-deep buffering.
                kwargs["pipeline_mode"] = pl.Buffered(1)
            return pl.BlockSpec(arr.shape, lambda i, _n=n: (0,) * _n, **kwargs)

        in_specs = [pl.BlockSpec((TB, D), lambda i: (i, 0)),   # w1 tile
                    pl.BlockSpec((TB, D), lambda i: (i, 0))]   # w2 tile
        in_specs += [const_spec(a) for a in w_args]
        out_spec = pl.BlockSpec((TB, Lp), lambda i: (i, 0))

        out_pad = pl.pallas_call(
            kernel,
            out_shape=jax.ShapeDtypeStruct((Bp, Lp), jnp.float32),
            grid=(n_tiles,),
            in_specs=in_specs,
            out_specs=out_spec,
            compiler_params=pltpu.CompilerParams(
                dimension_semantics=("parallel",),
                vmem_limit_bytes=vmem_limit),
        )(w1p, w2p, *w_args)
        return jax.block_until_ready(out_pad)

    use_buffered = hasattr(pl, "Buffered")
    try:
        out_pad = _run(use_buffered)
    except Exception:
        if not use_buffered:
            raise
        # Buffered(1) not supported by this jax build -> default 2-deep buffers.
        out_pad = _run(False)

    return out_pad[:B, :L]


# ----------------------------------------------------------------------------
# Pure-JAX reference (mirrors the torch module, dropout = identity)
# ----------------------------------------------------------------------------
def _reference_forward(w1, w2, params, *, add_single_words, normalize_embeddings):
    cat = jnp.concatenate([w1, w2], axis=1)
    composed = cat @ params["matrix_w"].T + params["matrix_b"]
    if normalize_embeddings:
        n = jnp.sqrt(jnp.sum(composed * composed, axis=1, keepdims=True))
        composed = composed / jnp.maximum(n, 1e-12)
    if add_single_words:
        composed = jnp.concatenate([w1, w2, composed], axis=1)
    h = jnp.maximum(composed @ params["hidden_w"].T + params["hidden_b"], 0.0)
    return h @ params["out_w"].T + params["out_b"]


if __name__ == "__main__":
    # Small shapes consistent with the module: two word embeddings of size D.
    B, D, H, L = 32, 32, 48, 5

    key = jax.random.PRNGKey(0)
    k_w1, k_w2, k_p = jax.random.split(key, 3)
    w1 = jax.random.normal(k_w1, (B, D), jnp.float32)
    w2 = jax.random.normal(k_w2, (B, D), jnp.float32)

    for add_single_words in (True, False):
        for normalize_embeddings in (True, False):
            forward_dim = 3 * D if add_single_words else D
            ks = jax.random.split(jax.random.fold_in(k_p, int(add_single_words)), 6)
            params = {
                "matrix_w": jax.random.normal(ks[0], (D, 2 * D), jnp.float32) * 0.1,
                "matrix_b": jax.random.normal(ks[1], (D,), jnp.float32) * 0.1,
                "hidden_w": jax.random.normal(ks[2], (H, forward_dim), jnp.float32) * 0.1,
                "hidden_b": jax.random.normal(ks[3], (H,), jnp.float32) * 0.1,
                "out_w":    jax.random.normal(ks[4], (L, H), jnp.float32) * 0.1,
                "out_b":    jax.random.normal(ks[5], (L,), jnp.float32) * 0.1,
            }

            ref = _reference_forward(
                w1, w2, params,
                add_single_words=add_single_words,
                normalize_embeddings=normalize_embeddings)

            # Default bf16 MXU path (loose tolerance vs the f32 reference).
            packed_bf16 = pack_params(
                params, add_single_words=add_single_words,
                normalize_embeddings=normalize_embeddings)   # bf16 default
            out = matrix_transfer_classifier_forward(
                w1, w2, packed_bf16, block_b=16)             # 2 grid steps at B=32
            out = jax.block_until_ready(out)
            np.testing.assert_allclose(np.asarray(out), np.asarray(ref),
                                       rtol=5e-2, atol=5e-2)

            # f32 validation path (exact math, tight tolerance).
            packed_f32 = pack_params(
                params, add_single_words=add_single_words,
                normalize_embeddings=normalize_embeddings,
                compute_dtype=jnp.float32)
            out32 = matrix_transfer_classifier_forward(
                w1, w2, packed_f32, block_b=8)               # 4 grid steps at B=32
            out32 = jax.block_until_ready(out32)
            np.testing.assert_allclose(np.asarray(out32), np.asarray(ref),
                                       rtol=1e-5, atol=1e-5)

    print("KERNEL_OK")
</pallas_src>

<mosaic_0001>
module attributes {stable_mosaic.version = 11 : i64} {
  func.func @_classifier_kernel(%arg0: i32, %arg1: memref<16x32xbf16, #tpu.memory_space<vmem>>, %arg2: memref<16x32xbf16, #tpu.memory_space<vmem>>, %arg3: memref<32x128xbf16, #tpu.memory_space<vmem>>, %arg4: memref<32x128xbf16, #tpu.memory_space<vmem>>, %arg5: memref<1x128xf32, #tpu.memory_space<vmem>>, %arg6: memref<32x128xbf16, #tpu.memory_space<vmem>>, %arg7: memref<32x128xbf16, #tpu.memory_space<vmem>>, %arg8: memref<128x128xbf16, #tpu.memory_space<vmem>>, %arg9: memref<1x128xf32, #tpu.memory_space<vmem>>, %arg10: memref<128x128xbf16, #tpu.memory_space<vmem>>, %arg11: memref<1x128xf32, #tpu.memory_space<vmem>>, %arg12: memref<16x128xf32, #tpu.memory_space<vmem>>) attributes {dimension_semantics = [#tpu.dimension_semantics<parallel>], iteration_bounds = array<i64: 2>, scalar_prefetch = 0 : i64, scratch_operands = 0 : i64, tpu.core_type = #tpu.core_type<tc>, window_params = [{transform_indices = @transform_0, window_bounds = array<i64: 16, 32>}, {transform_indices = @transform_1, window_bounds = array<i64: 16, 32>}, {pipeline_mode = #tpu.pipeline_mode<synchronous>, transform_indices = @transform_2, window_bounds = array<i64: 32, 128>}, {pipeline_mode = #tpu.pipeline_mode<synchronous>, transform_indices = @transform_3, window_bounds = array<i64: 32, 128>}, {pipeline_mode = #tpu.pipeline_mode<synchronous>, transform_indices = @transform_4, window_bounds = array<i64: 1, 128>}, {pipeline_mode = #tpu.pipeline_mode<synchronous>, transform_indices = @transform_5, window_bounds = array<i64: 32, 128>}, {pipeline_mode = #tpu.pipeline_mode<synchronous>, transform_indices = @transform_6, window_bounds = array<i64: 32, 128>}, {pipeline_mode = #tpu.pipeline_mode<synchronous>, transform_indices = @transform_7, window_bounds = array<i64: 128, 128>}, {pipeline_mode = #tpu.pipeline_mode<synchronous>, transform_indices = @transform_8, window_bounds = array<i64: 1, 128>}, {pipeline_mode = #tpu.pipeline_mode<synchronous>, transform_indices = @transform_9, window_bounds = array<i64: 128, 128>}, {pipeline_mode = #tpu.pipeline_mode<synchronous>, transform_indices = @transform_10, window_bounds = array<i64: 1, 128>}, {transform_indices = @transform_11, window_bounds = array<i64: 16, 128>}]} {
    %c0 = arith.constant 0 : index
    %c0_0 = arith.constant 0 : index
    %0 = vector.load %arg1[%c0, %c0_0] : memref<16x32xbf16, #tpu.memory_space<vmem>>, vector<16x32xbf16>
    %c0_1 = arith.constant 0 : index
    %c0_2 = arith.constant 0 : index
    %1 = vector.load %arg2[%c0_1, %c0_2] : memref<16x32xbf16, #tpu.memory_space<vmem>>, vector<16x32xbf16>
    %c0_3 = arith.constant 0 : index
    %c0_4 = arith.constant 0 : index
    %2 = vector.load %arg3[%c0_3, %c0_4] : memref<32x128xbf16, #tpu.memory_space<vmem>>, vector<32x128xbf16>
    %cst = arith.constant dense<0.000000e+00> : vector<16x128xf32>
    %3 = tpu.matmul %0, %2, %cst {dimension_numbers = #tpu.dot_dimension_numbers<[1], [0], [0], [1], [0, 0, 1, 1], [], []>} : vector<16x32xbf16>, vector<32x128xbf16>, vector<16x128xf32> -> vector<16x128xf32>
    %c0_5 = arith.constant 0 : index
    %c0_6 = arith.constant 0 : index
    %4 = vector.load %arg4[%c0_5, %c0_6] : memref<32x128xbf16, #tpu.memory_space<vmem>>, vector<32x128xbf16>
    %cst_7 = arith.constant dense<0.000000e+00> : vector<16x128xf32>
    %5 = tpu.matmul %1, %4, %cst_7 {dimension_numbers = #tpu.dot_dimension_numbers<[1], [0], [0], [1], [0, 0, 1, 1], [], []>} : vector<16x32xbf16>, vector<32x128xbf16>, vector<16x128xf32> -> vector<16x128xf32>
    %6 = arith.addf %3, %5 : vector<16x128xf32>
    %c0_8 = arith.constant 0 : index
    %c0_9 = arith.constant 0 : index
    %7 = vector.load %arg5[%c0_8, %c0_9] : memref<1x128xf32, #tpu.memory_space<vmem>>, vector<1x128xf32>
    %8 = vector.broadcast %7 : vector<1x128xf32> to vector<16x128xf32>
    %9 = arith.addf %6, %8 : vector<16x128xf32>
    %10 = arith.mulf %9, %9 : vector<16x128xf32>
    %cst_10 = arith.constant dense<0.000000e+00> : vector<16xf32>
    %11 = vector.multi_reduction <add>, %10, %cst_10 [1] : vector<16x128xf32> to vector<16xf32>
    %12 = vector.shape_cast %11 : vector<16xf32> to vector<16x1xf32>
    %cst_11 = arith.constant 1.000000e-24 : f32
    %13 = vector.broadcast %cst_11 : f32 to vector<16x1xf32>
    %14 = arith.maximumf %12, %13 : vector<16x1xf32>
    %15 = math.rsqrt %14 : vector<16x1xf32>
    %16 = vector.broadcast %15 : vector<16x1xf32> to vector<16x128xf32>
    %17 = arith.mulf %9, %16 : vector<16x128xf32>
    %18 = arith.truncf %17 : vector<16x128xf32> to vector<16x128xbf16>
    %c0_12 = arith.constant 0 : index
    %c0_13 = arith.constant 0 : index
    %19 = vector.load %arg8[%c0_12, %c0_13] : memref<128x128xbf16, #tpu.memory_space<vmem>>, vector<128x128xbf16>
    %cst_14 = arith.constant dense<0.000000e+00> : vector<16x128xf32>
    %20 = tpu.matmul %18, %19, %cst_14 {dimension_numbers = #tpu.dot_dimension_numbers<[1], [0], [0], [1], [0, 0, 1, 1], [], []>} : vector<16x128xbf16>, vector<128x128xbf16>, vector<16x128xf32> -> vector<16x128xf32>
    %c0_15 = arith.constant 0 : index
    %c0_16 = arith.constant 0 : index
    %21 = vector.load %arg9[%c0_15, %c0_16] : memref<1x128xf32, #tpu.memory_space<vmem>>, vector<1x128xf32>
    %22 = vector.broadcast %21 : vector<1x128xf32> to vector<16x128xf32>
    %23 = arith.addf %20, %22 : vector<16x128xf32>
    %c0_17 = arith.constant 0 : index
    %c0_18 = arith.constant 0 : index
    %24 = vector.load %arg6[%c0_17, %c0_18] : memref<32x128xbf16, #tpu.memory_space<vmem>>, vector<32x128xbf16>
    %cst_19 = arith.constant dense<0.000000e+00> : vector<16x128xf32>
    %25 = tpu.matmul %0, %24, %cst_19 {dimension_numbers = #tpu.dot_dimension_numbers<[1], [0], [0], [1], [0, 0, 1, 1], [], []>} : vector<16x32xbf16>, vector<32x128xbf16>, vector<16x128xf32> -> vector<16x128xf32>
    %26 = arith.addf %23, %25 : vector<16x128xf32>
    %c0_20 = arith.constant 0 : index
    %c0_21 = arith.constant 0 : index
    %27 = vector.load %arg7[%c0_20, %c0_21] : memref<32x128xbf16, #tpu.memory_space<vmem>>, vector<32x128xbf16>
    %cst_22 = arith.constant dense<0.000000e+00> : vector<16x128xf32>
    %28 = tpu.matmul %1, %27, %cst_22 {dimension_numbers = #tpu.dot_dimension_numbers<[1], [0], [0], [1], [0, 0, 1, 1], [], []>} : vector<16x32xbf16>, vector<32x128xbf16>, vector<16x128xf32> -> vector<16x128xf32>
    %29 = arith.addf %26, %28 : vector<16x128xf32>
    %cst_23 = arith.constant 0.000000e+00 : f32
    %30 = vector.broadcast %cst_23 : f32 to vector<16x128xf32>
    %31 = arith.maximumf %29, %30 : vector<16x128xf32>
    %32 = arith.truncf %31 : vector<16x128xf32> to vector<16x128xbf16>
    %c0_24 = arith.constant 0 : index
    %c0_25 = arith.constant 0 : index
    %33 = vector.load %arg10[%c0_24, %c0_25] : memref<128x128xbf16, #tpu.memory_space<vmem>>, vector<128x128xbf16>
    %cst_26 = arith.constant dense<0.000000e+00> : vector<16x128xf32>
    %34 = tpu.matmul %32, %33, %cst_26 {dimension_numbers = #tpu.dot_dimension_numbers<[1], [0], [0], [1], [0, 0, 1, 1], [], []>} : vector<16x128xbf16>, vector<128x128xbf16>, vector<16x128xf32> -> vector<16x128xf32>
    %c0_27 = arith.constant 0 : index
    %c0_28 = arith.constant 0 : index
    %35 = vector.load %arg11[%c0_27, %c0_28] : memref<1x128xf32, #tpu.memory_space<vmem>>, vector<1x128xf32>
    %36 = vector.broadcast %35 : vector<1x128xf32> to vector<16x128xf32>
    %37 = arith.addf %34, %36 : vector<16x128xf32>
    %c0_29 = arith.constant 0 : index
    %c0_30 = arith.constant 0 : index
    %38 = vector.load %arg12[%c0_29, %c0_30] : memref<16x128xf32, #tpu.memory_space<vmem>>, vector<16x128xf32>
    tpu.vector_store %arg12[%c0_29, %c0_30], %37 {strides = array<i32>} : memref<16x128xf32, #tpu.memory_space<vmem>>, vector<16x128xf32>,
    return
  }
  func.func @transform_0(%arg0: i32) -> (i32, i32) {
    %c0_i32 = arith.constant 0 : i32
    %c0_i32_0 = arith.constant 0 : i32
    return %arg0, %c0_i32 : i32, i32
  }
  func.func @transform_1(%arg0: i32) -> (i32, i32) {
    %c0_i32 = arith.constant 0 : i32
    %c0_i32_0 = arith.constant 0 : i32
    return %arg0, %c0_i32 : i32, i32
  }
  func.func @transform_2(%arg0: i32) -> (i32, i32) {
    %c0_i32 = arith.constant 0 : i32
    %c0_i32_0 = arith.constant 0 : i32
    %c0_i32_1 = arith.constant 0 : i32
    return %c0_i32, %c0_i32_0 : i32, i32
  }
  func.func @transform_3(%arg0: i32) -> (i32, i32) {
    %c0_i32 = arith.constant 0 : i32
    %c0_i32_0 = arith.constant 0 : i32
    %c0_i32_1 = arith.constant 0 : i32
    return %c0_i32, %c0_i32_0 : i32, i32
  }
  func.func @transform_4(%arg0: i32) -> (i32, i32) {
    %c0_i32 = arith.constant 0 : i32
    %c0_i32_0 = arith.constant 0 : i32
    %c0_i32_1 = arith.constant 0 : i32
    return %c0_i32, %c0_i32_0 : i32, i32
  }
  func.func @transform_5(%arg0: i32) -> (i32, i32) {
    %c0_i32 = arith.constant 0 : i32
    %c0_i32_0 = arith.constant 0 : i32
    %c0_i32_1 = arith.constant 0 : i32
    return %c0_i32, %c0_i32_0 : i32, i32
  }
  func.func @transform_6(%arg0: i32) -> (i32, i32) {
    %c0_i32 = arith.constant 0 : i32
    %c0_i32_0 = arith.constant 0 : i32
    %c0_i32_1 = arith.constant 0 : i32
    return %c0_i32, %c0_i32_0 : i32, i32
  }
  func.func @transform_7(%arg0: i32) -> (i32, i32) {
    %c0_i32 = arith.constant 0 : i32
    %c0_i32_0 = arith.constant 0 : i32
    %c0_i32_1 = arith.constant 0 : i32
    return %c0_i32, %c0_i32_0 : i32, i32
  }
  func.func @transform_8(%arg0: i32) -> (i32, i32) {
    %c0_i32 = arith.constant 0 : i32
    %c0_i32_0 = arith.constant 0 : i32
    %c0_i32_1 = arith.constant 0 : i32
    return %c0_i32, %c0_i32_0 : i32, i32
  }
  func.func @transform_9(%arg0: i32) -> (i32, i32) {
    %c0_i32 = arith.constant 0 : i32
    %c0_i32_0 = arith.constant 0 : i32
    %c0_i32_1 = arith.constant 0 : i32
    return %c0_i32, %c0_i32_0 : i32, i32
  }
  func.func @transform_10(%arg0: i32) -> (i32, i32) {
    %c0_i32 = arith.constant 0 : i32
    %c0_i32_0 = arith.constant 0 : i32
    %c0_i32_1 = arith.constant 0 : i32
    return %c0_i32, %c0_i32_0 : i32, i32
  }
  func.func @transform_11(%arg0: i32) -> (i32, i32) {
    %c0_i32 = arith.constant 0 : i32
    %c0_i32_0 = arith.constant 0 : i32
    return %arg0, %c0_i32 : i32, i32
  }
}

module attributes {stable_mosaic.version = 11 : i64} {
  func.func @_classifier_kernel(%arg0: i32, %arg1: memref<16x32xbf16, #tpu.memory_space<vmem>>, %arg2: memref<16x32xbf16, #tpu.memory_space<vmem>>, %arg3: memref<32x128xbf16, #tpu.memory_space<vmem>>, %arg4: memref<32x128xbf16, #tpu.memory_space<vmem>>, %arg5: memref<1x128xf32, #tpu.memory_space<vmem>>, %arg6: memref<32x128xbf16, #tpu.memory_space<vmem>>, %arg7: memref<32x128xbf16, #tpu.memory_space<vmem>>, %arg8: memref<128x128xbf16, #tpu.memory_space<vmem>>, %arg9: memref<1x128xf32, #tpu.memory_space<vmem>>, %arg10: memref<128x128xbf16, #tpu.memory_space<vmem>>, %arg11: memref<1x128xf32, #tpu.memory_space<vmem>>, %arg12: memref<16x128xf32, #tpu.memory_space<vmem>>) attributes {dimension_semantics = [#tpu.dimension_semantics<parallel>], iteration_bounds = array<i64: 2>, scalar_prefetch = 0 : i64, scratch_operands = 0 : i64, tpu.core_type = #tpu.core_type<tc>, window_params = [{transform_indices = @transform_0, window_bounds = array<i64: 16, 32>}, {transform_indices = @transform_1, window_bounds = array<i64: 16, 32>}, {pipeline_mode = #tpu.pipeline_mode<synchronous>, transform_indices = @transform_2, window_bounds = array<i64: 32, 128>}, {pipeline_mode = #tpu.pipeline_mode<synchronous>, transform_indices = @transform_3, window_bounds = array<i64: 32, 128>}, {pipeline_mode = #tpu.pipeline_mode<synchronous>, transform_indices = @transform_4, window_bounds = array<i64: 1, 128>}, {pipeline_mode = #tpu.pipeline_mode<synchronous>, transform_indices = @transform_5, window_bounds = array<i64: 32, 128>}, {pipeline_mode = #tpu.pipeline_mode<synchronous>, transform_indices = @transform_6, window_bounds = array<i64: 32, 128>}, {pipeline_mode = #tpu.pipeline_mode<synchronous>, transform_indices = @transform_7, window_bounds = array<i64: 128, 128>}, {pipeline_mode = #tpu.pipeline_mode<synchronous>, transform_indices = @transform_8, window_bounds = array<i64: 1, 128>}, {pipeline_mode = #tpu.pipeline_mode<synchronous>, transform_indices = @transform_9, window_bounds = array<i64: 128, 128>}, {pipeline_mode = #tpu.pipeline_mode<synchronous>, transform_indices = @transform_10, window_bounds = array<i64: 1, 128>}, {transform_indices = @transform_11, window_bounds = array<i64: 16, 128>}]} {
    %c0 = arith.constant 0 : index
    %c0_0 = arith.constant 0 : index
    %0 = vector.load %arg1[%c0, %c0_0] : memref<16x32xbf16, #tpu.memory_space<vmem>>, vector<16x32xbf16>
    %c0_1 = arith.constant 0 : index
    %c0_2 = arith.constant 0 : index
    %1 = vector.load %arg2[%c0_1, %c0_2] : memref<16x32xbf16, #tpu.memory_space<vmem>>, vector<16x32xbf16>
    %c0_3 = arith.constant 0 : index
    %c0_4 = arith.constant 0 : index
    %2 = vector.load %arg3[%c0_3, %c0_4] : memref<32x128xbf16, #tpu.memory_space<vmem>>, vector<32x128xbf16>
    %cst = arith.constant dense<0.000000e+00> : vector<16x128xf32>
    %3 = tpu.matmul %0, %2, %cst {dimension_numbers = #tpu.dot_dimension_numbers<[1], [0], [0], [1], [0, 0, 1, 1], [], []>} : vector<16x32xbf16>, vector<32x128xbf16>, vector<16x128xf32> -> vector<16x128xf32>
    %c0_5 = arith.constant 0 : index
    %c0_6 = arith.constant 0 : index
    %4 = vector.load %arg4[%c0_5, %c0_6] : memref<32x128xbf16, #tpu.memory_space<vmem>>, vector<32x128xbf16>
    %cst_7 = arith.constant dense<0.000000e+00> : vector<16x128xf32>
    %5 = tpu.matmul %1, %4, %cst_7 {dimension_numbers = #tpu.dot_dimension_numbers<[1], [0], [0], [1], [0, 0, 1, 1], [], []>} : vector<16x32xbf16>, vector<32x128xbf16>, vector<16x128xf32> -> vector<16x128xf32>
    %6 = arith.addf %3, %5 : vector<16x128xf32>
    %c0_8 = arith.constant 0 : index
    %c0_9 = arith.constant 0 : index
    %7 = vector.load %arg5[%c0_8, %c0_9] : memref<1x128xf32, #tpu.memory_space<vmem>>, vector<1x128xf32>
    %8 = vector.broadcast %7 : vector<1x128xf32> to vector<16x128xf32>
    %9 = arith.addf %6, %8 : vector<16x128xf32>
    %10 = arith.mulf %9, %9 : vector<16x128xf32>
    %cst_10 = arith.constant dense<0.000000e+00> : vector<16xf32>
    %11 = vector.multi_reduction <add>, %10, %cst_10 [1] : vector<16x128xf32> to vector<16xf32>
    %12 = vector.shape_cast %11 : vector<16xf32> to vector<16x1xf32>
    %cst_11 = arith.constant 1.000000e-24 : f32
    %13 = vector.broadcast %cst_11 : f32 to vector<16x1xf32>
    %14 = arith.maximumf %12, %13 : vector<16x1xf32>
    %15 = math.rsqrt %14 : vector<16x1xf32>
    %16 = vector.broadcast %15 : vector<16x1xf32> to vector<16x128xf32>
    %17 = arith.mulf %9, %16 : vector<16x128xf32>
    %18 = arith.truncf %17 : vector<16x128xf32> to vector<16x128xbf16>
    %c0_12 = arith.constant 0 : index
    %c0_13 = arith.constant 0 : index
    %19 = vector.load %arg8[%c0_12, %c0_13] : memref<128x128xbf16, #tpu.memory_space<vmem>>, vector<128x128xbf16>
    %cst_14 = arith.constant dense<0.000000e+00> : vector<16x128xf32>
    %20 = tpu.matmul %18, %19, %cst_14 {dimension_numbers = #tpu.dot_dimension_numbers<[1], [0], [0], [1], [0, 0, 1, 1], [], []>} : vector<16x128xbf16>, vector<128x128xbf16>, vector<16x128xf32> -> vector<16x128xf32>
    %c0_15 = arith.constant 0 : index
    %c0_16 = arith.constant 0 : index
    %21 = vector.load %arg9[%c0_15, %c0_16] : memref<1x128xf32, #tpu.memory_space<vmem>>, vector<1x128xf32>
    %22 = vector.broadcast %21 : vector<1x128xf32> to vector<16x128xf32>
    %23 = arith.addf %20, %22 : vector<16x128xf32>
    %c0_17 = arith.constant 0 : index
    %c0_18 = arith.constant 0 : index
    %24 = vector.load %arg6[%c0_17, %c0_18] : memref<32x128xbf16, #tpu.memory_space<vmem>>, vector<32x128xbf16>
    %cst_19 = arith.constant dense<0.000000e+00> : vector<16x128xf32>
    %25 = tpu.matmul %0, %24, %cst_19 {dimension_numbers = #tpu.dot_dimension_numbers<[1], [0], [0], [1], [0, 0, 1, 1], [], []>} : vector<16x32xbf16>, vector<32x128xbf16>, vector<16x128xf32> -> vector<16x128xf32>
    %26 = arith.addf %23, %25 : vector<16x128xf32>
    %c0_20 = arith.constant 0 : index
    %c0_21 = arith.constant 0 : index
    %27 = vector.load %arg7[%c0_20, %c0_21] : memref<32x128xbf16, #tpu.memory_space<vmem>>, vector<32x128xbf16>
    %cst_22 = arith.constant dense<0.000000e+00> : vector<16x128xf32>
    %28 = tpu.matmul %1, %27, %cst_22 {dimension_numbers = #tpu.dot_dimension_numbers<[1], [0], [0], [1], [0, 0, 1, 1], [], []>} : vector<16x32xbf16>, vector<32x128xbf16>, vector<16x128xf32> -> vector<16x128xf32>
    %29 = arith.addf %26, %28 : vector<16x128xf32>
    %cst_23 = arith.constant 0.000000e+00 : f32
    %30 = vector.broadcast %cst_23 : f32 to vector<16x128xf32>
    %31 = arith.maximumf %29, %30 : vector<16x128xf32>
    %32 = arith.truncf %31 : vector<16x128xf32> to vector<16x128xbf16>
    %c0_24 = arith.constant 0 : index
    %c0_25 = arith.constant 0 : index
    %33 = vector.load %arg10[%c0_24, %c0_25] : memref<128x128xbf16, #tpu.memory_space<vmem>>, vector<128x128xbf16>
    %cst_26 = arith.constant dense<0.000000e+00> : vector<16x128xf32>
    %34 = tpu.matmul %32, %33, %cst_26 {dimension_numbers = #tpu.dot_dimension_numbers<[1], [0], [0], [1], [0, 0, 1, 1], [], []>} : vector<16x128xbf16>, vector<128x128xbf16>, vector<16x128xf32> -> vector<16x128xf32>
    %c0_27 = arith.constant 0 : index
    %c0_28 = arith.constant 0 : index
    %35 = vector.load %arg11[%c0_27, %c0_28] : memref<1x128xf32, #tpu.memory_space<vmem>>, vector<1x128xf32>
    %36 = vector.broadcast %35 : vector<1x128xf32> to vector<16x128xf32>
    %37 = arith.addf %34, %36 : vector<16x128xf32>
    %c0_29 = arith.constant 0 : index
    %c0_30 = arith.constant 0 : index
    %38 = vector.load %arg12[%c0_29, %c0_30] : memref<16x128xf32, #tpu.memory_space<vmem>>, vector<16x128xf32>
    tpu.vector_store %arg12[%c0_29, %c0_30], %37 {strides = array<i32>} : memref<16x128xf32, #tpu.memory_space<vmem>>, vector<16x128xf32>,
    return
  }
  func.func @transform_0(%arg0: i32) -> (i32, i32) {
    %c0_i32 = arith.constant 0 : i32
    %c0_i32_0 = arith.constant 0 : i32
    return %arg0, %c0_i32 : i32, i32
  }
  func.func @transform_1(%arg0: i32) -> (i32, i32) {
    %c0_i32 = arith.constant 0 : i32
    %c0_i32_0 = arith.constant 0 : i32
    return %arg0, %c0_i32 : i32, i32
  }
  func.func @transform_2(%arg0: i32) -> (i32, i32) {
    %c0_i32 = arith.constant 0 : i32
    %c0_i32_0 = arith.constant 0 : i32
    %c0_i32_1 = arith.constant 0 : i32
    return %c0_i32, %c0_i32_0 : i32, i32
  }
  func.func @transform_3(%arg0: i32) -> (i32, i32) {
    %c0_i32 = arith.constant 0 : i32
    %c0_i32_0 = arith.constant 0 : i32
    %c0_i32_1 = arith.constant 0 : i32
    return %c0_i32, %c0_i32_0 : i32, i32
  }
  func.func @transform_4(%arg0: i32) -> (i32, i32) {
    %c0_i32 = arith.constant 0 : i32
    %c0_i32_0 = arith.constant 0 : i32
    %c0_i32_1 = arith.constant 0 : i32
    return %c0_i32, %c0_i32_0 : i32, i32
  }
  func.func @transform_5(%arg0: i32) -> (i32, i32) {
    %c0_i32 = arith.constant 0 : i32
    %c0_i32_0 = arith.constant 0 : i32
    %c0_i32_1 = arith.constant 0 : i32
    return %c0_i32, %c0_i32_0 : i32, i32
  }
  func.func @transform_6(%arg0: i32) -> (i32, i32) {
    %c0_i32 = arith.constant 0 : i32
    %c0_i32_0 = arith.constant 0 : i32
    %c0_i32_1 = arith.constant 0 : i32
    return %c0_i32, %c0_i32_0 : i32, i32
  }
  func.func @transform_7(%arg0: i32) -> (i32, i32) {
    %c0_i32 = arith.constant 0 : i32
    %c0_i32_0 = arith.constant 0 : i32
    %c0_i32_1 = arith.constant 0 : i32
    return %c0_i32, %c0_i32_0 : i32, i32
  }
  func.func @transform_8(%arg0: i32) -> (i32, i32) {
    %c0_i32 = arith.constant 0 : i32
    %c0_i32_0 = arith.constant 0 : i32
    %c0_i32_1 = arith.constant 0 : i32
    return %c0_i32, %c0_i32_0 : i32, i32
  }
  func.func @transform_9(%arg0: i32) -> (i32, i32) {
    %c0_i32 = arith.constant 0 : i32
    %c0_i32_0 = arith.constant 0 : i32
    %c0_i32_1 = arith.constant 0 : i32
    return %c0_i32, %c0_i32_0 : i32, i32
  }
  func.func @transform_10(%arg0: i32) -> (i32, i32) {
    %c0_i32 = arith.constant 0 : i32
    %c0_i32_0 = arith.constant 0 : i32
    %c0_i32_1 = arith.constant 0 : i32
    return %c0_i32, %c0_i32_0 : i32, i32
  }
  func.func @transform_11(%arg0: i32) -> (i32, i32) {
    %c0_i32 = arith.constant 0 : i32
    %c0_i32_0 = arith.constant 0 : i32
    return %arg0, %c0_i32 : i32, i32
  }
}

</mosaic_0001>

<bundles_post_ra>
// kernel: tpu_custom_call.1
= control target key start
LH: loop header
LB: loop body
LE: loop exit
PB: predicated region body
PF: predicated region fallthrough
CT: control target
= control target key end

     0   :  { %s2269_s0 = inlined_call_operand.hbm [shape: bf16[32,32], index: 0, kind: input, shape index: {}]   ;;  %s2270_s1 = inlined_call_operand.hbm [shape: bf16[32,32], index: 1, kind: input, shape index: {}]   ;;  %s2271_s2 = inlined_call_operand.hbm [shape: bf16[32,128], index: 2, kind: input, shape index: {}]   ;;  %s2272_s3 = inlined_call_operand.hbm [shape: bf16[32,128], index: 3, kind: input, shape index: {}]   ;;  %s2273_s4 = inlined_call_operand.vmem [shape: f32[1,128], index: 4, kind: input, shape index: {}]   ;;  %s2274_s5 = inlined_call_operand.hbm [shape: bf16[32,128], index: 5, kind: input, shape index: {}]   ;;  %s2275_s6 = inlined_call_operand.hbm [shape: bf16[32,128], index: 6, kind: input, shape index: {}]   ;;  %s2276_s7 = inlined_call_operand.hbm [shape: bf16[128,128], index: 7, kind: input, shape index: {}]   ;;  %s2277_s8 = inlined_call_operand.vmem [shape: f32[1,128], index: 8, kind: input, shape index: {}]   ;;  %s2278_s9 = inlined_call_operand.hbm [shape: bf16[128,128], index: 9, kind: input, shape index: {}]   ;;  %s2279_s10 = inlined_call_operand.vmem [shape: f32[1,128], index: 10, kind: input, shape index: {}]   ;;  %s2280_s11 = inlined_call_operand.hbm [shape: f32[32,128], index: 11, kind: output, shape index: {}]  }
   0x1   :  { %2288 = sst [smem:[#allocation25_spill]] %s2269_s0 }
   0x2   :  { %2289 = sst [smem:[#allocation26_spill]] %s2271_s2 }
   0x3   :  { %2290 = sst [smem:[#allocation27_spill]] %s2272_s3 }
   0x4   :  { %2291 = sst [smem:[#allocation28_spill]] %s2274_s5 }
   0x5   :  { %2292 = sst [smem:[#allocation29_spill]] %s2275_s6 }
   0x6   :  { %2293 = sst [smem:[#allocation30_spill]] %s2276_s7 }
   0x7   :  { %2294 = sst [smem:[#allocation31_spill]] %s2278_s9 }
   0x8   :  { %16 = vsyncpa [#allocation3], 0 }
   0x9   :  { %18 = vsyncpa [#allocation3 + $0x1], 0 }
   0xa   :  { %19 = vsyncpa [#allocation6], 0 }
   0xb   :  { %21 = vsyncpa [#allocation6 + $0x1], 0 }
   0xc   :  { %22 = vsyncpa [#allocation9], 0 }
   0xd   :  { %23 = vsyncpa [#allocation12], 0 }
   0xe   :  { %24 = vsyncpa [#allocation15], 0 }
   0xf   :  { %25 = vsyncpa [#allocation4], 0 }
  0x10   :  { %27 = vsyncpa [#allocation4 + $0x1], 0  ;;  %s1896_s17 = smov 0   ;;  %s1898_s18 = smov 0  }
  0x11   :  { %s1900_s19 = smov 0   ;;  %s1902_s20 = smov 0  }
  0x12 LB: > { %s1821_s21 = smov [#allocation7]   ;;  %s1917_s23 = sadd.s32 4294967295, %s1819_s20   ;;  %s1819_s20 = sphi %s1902_s20, %s2329_s20   ;;  %s1815_s19 = sphi %s1900_s19, %s2328_s19   ;;  %s1811_s18 = sphi %s1898_s18, %s2327_s18   ;;  %s1807_s17 = sphi %s1896_s17, %s2326_s17  }
  0x13   : > { %s317_s22 = sshll.u32 %s1821_s21, 4  ;;  %p1208_p0 = scmp.ge.s32.totalorder %s1819_s20, 1  ;;  %s318_s22 = int_to_ptr.vmem [resolvable:$true] %s317_s22 }
  0x14   : > { %p2285_p1 = scmp.eq.s32.totalorder %s1917_s23, 0  ;;  %p305_p2 = scmp.lt.s32.totalorder %s1819_s20, 3 }
  0x15   : > { %s1822_s25 = smov [#allocation8]   ;;  %s1823_s28 = smov [#allocation11]  }
  0x16   : > { %p1922_p3 = pnand %p1208_p0, %p305_p2  ;;  %s330_s26 = sshll.u32 %s1822_s25, 4  ;;  %s1935_s26 = int_to_ptr.vmem [resolvable:$true] %s330_s26 }
  0x17   : > { %s359_s29 = sshll.u32 %s1823_s28, 4  ;;  %s1534_s12 = scalar_lea.vmem %s318_s22, 256  ;;  %s1937_s29 = int_to_ptr.vmem [resolvable:$true] %s359_s29 }
  0x18   : > { %p1405_p5 = pneg %p1922_p3  ;;  %p1535_p8 = scmp.ne.s32.totalorder %s318_s22, %s1534_s12 }
  0x19   : > { %p1542_p11 = scmp.lt.s32.totalorder %s318_s22, %s318_s22  ;;  %p1543_p12 = scmp.lt.s32.totalorder %s1534_s12, %s1534_s12 }
  0x1a   : > { %p1931_p6 = pnand %p1405_p5, %p2285_p1 }
  0x1b   : > { %p1544_p13 = por %p1543_p12, %p1542_p11 }
  0x1c   : > { %p1941_p7 = pneg %p1931_p6 }
  0x1e   : > { %p1537_p9 = pnand %p1535_p8, %p1941_p7 }
  0x20   : > { %p1538_p10 = pneg %p1537_p9 }
  0x22   : > { %p1545_p0 = pnand %p1544_p13, %p1538_p10 }
  0x24   : > { %1548 = shalt.err (!%p1545_p0)
}
  0x25   : > { %s2281_s13 = smov 64   ;;  %s2283_s14 = smov 4  }
  0x26   : > { %s2298_s2 = sld [smem:[#allocation26_spill]]  ;;  %s1560_s21 = scalar_lea.vmem %s1935_s26, 256 }
  0x27   : > { %p1561_p2 = scmp.ne.s32.totalorder %s1935_s26, %s1560_s21  ;;  %p1568_p9 = scmp.lt.s32.totalorder %s1935_s26, %s1935_s26 }
  0x28   : > { %p1569_p10 = scmp.lt.s32.totalorder %s1560_s21, %s1560_s21 }
  0x29   : > { %p1563_p5 = pnand %p1561_p2, %p1941_p7 }
  0x2a   : > { %p1570_p11 = por %p1569_p10, %p1568_p9 }
  0x2b   : > { %p1564_p8 = pneg %p1563_p5 }
  0x2c   : > { %1408 = dma.hbm_to_vmem [thread:$0]  (!%p1931_p6), %s2298_s2, 256, %s318_s22, [#allocation6], %s2281_s13, %s2281_s13, %s2283_s14  }
  0x2d   : > { %p1571_p12 = pnand %p1570_p11, %p1564_p8 }
  0x2f   : > { %1574 = shalt.err (!%p1571_p12)
}
  0x30   : > { %s2299_s3 = sld [smem:[#allocation27_spill]]  ;;  %s1586_s22 = scalar_lea.vmem %s1937_s29, 256 }
  0x31   : > { %p1587_p13 = scmp.ne.s32.totalorder %s1937_s29, %s1586_s22  ;;  %p1594_p5 = scmp.lt.s32.totalorder %s1937_s29, %s1937_s29 }
  0x32   : > { %p1595_p8 = scmp.lt.s32.totalorder %s1586_s22, %s1586_s22 }
  0x33   : > { %p1589_p0 = pnand %p1587_p13, %p1941_p7 }
  0x34   : > { %p1596_p9 = por %p1595_p8, %p1594_p5 }
  0x35   : > { %p1590_p2 = pneg %p1589_p0 }
  0x36   : > { %1411 = dma.hbm_to_vmem [thread:$0]  (!%p1931_p6), %s2299_s3, 256, %s1935_s26, [#allocation9], %s2281_s13, %s2281_s13, %s2283_s14  }
  0x37   : > { %p1597_p10 = pnand %p1596_p9, %p1590_p2 }
  0x39   : > { %1600 = shalt.err (!%p1597_p10)
}
  0x3a   : > { %s2300_s6 = sld [smem:[#allocation29_spill]]  ;;  %s1826_s26 = smov [#allocation10]  }
  0x3b   : > { %s346_s16 = sshll.u32 %s1826_s26, 4  ;;  %s1827_s21 = smov [#allocation13]   ;;  %s347_s16 = int_to_ptr.vmem [resolvable:$true] %s346_s16 }
  0x3c   : > { %s372_s25 = sshll.u32 %s1827_s21, 4  ;;  %s1612_s28 = scalar_lea.vmem %s347_s16, 256  ;;  %s373_s25 = int_to_ptr.vmem [resolvable:$true] %s372_s25 }
  0x3d   : > { %p1613_p11 = scmp.ne.s32.totalorder %s347_s16, %s1612_s28  ;;  %p1620_p0 = scmp.lt.s32.totalorder %s347_s16, %s347_s16 }
  0x3e   : > { %p1621_p2 = scmp.lt.s32.totalorder %s1612_s28, %s1612_s28 }
  0x3f   : > { %p1615_p12 = pnand %p1613_p11, %p1941_p7 }
  0x40   : > { %1417 = dma.hbm_to_vmem [thread:$0]  (!%p1931_p6), %s2300_s6, 256, %s1937_s29, [#allocation12], %s2281_s13, %s2281_s13, %s2283_s14  }
  0x41   : > { %p1616_p13 = pneg %p1615_p12  ;;  %p1622_p5 = por %p1621_p2, %p1620_p0 }
  0x43   : > { %p1623_p8 = pnand %p1622_p5, %p1616_p13 }
  0x45   : > { %1626 = shalt.err (!%p1623_p8)
}
  0x46   : > { %s2301_s5 = sld [smem:[#allocation28_spill]]  ;;  %s1638_s12 = scalar_lea.vmem %s373_s25, 1024 }
  0x47   : > { %p1639_p9 = scmp.ne.s32.totalorder %s373_s25, %s1638_s12  ;;  %p1646_p12 = scmp.lt.s32.totalorder %s373_s25, %s373_s25 }
  0x48   : > { %p1647_p0 = scmp.lt.s32.totalorder %s1638_s12, %s1638_s12 }
  0x49   : > { %p1641_p10 = pnand %p1639_p9, %p1941_p7 }
  0x4a   : > { %p1648_p13 = por %p1647_p0, %p1646_p12 }
  0x4b   : > { %p1642_p11 = pneg %p1641_p10 }
  0x4c   : > { %1414 = dma.hbm_to_vmem [thread:$0]  (!%p1931_p6), %s2301_s5, 256, %s347_s16, [#allocation9], %s2281_s13, %s2281_s13, %s2283_s14  }
  0x4d   : > { %p1649_p2 = pnand %p1648_p13, %p1642_p11 }
  0x4f   : > { %1652 = shalt.err (!%p1649_p2)
}
  0x50   : > { %s2302_s7 = sld [smem:[#allocation30_spill]]  ;;  %s1828_s16 = smov [#allocation14]  }
  0x51   : > { %s388_s21 = sshll.u32 %s1828_s16, 4  ;;  %s389_s21 = int_to_ptr.vmem [resolvable:$true] %s388_s21 }
  0x52   : > { %s1664_s28 = scalar_lea.vmem %s389_s21, 1024  ;;  %p1672_p10 = scmp.lt.s32.totalorder %s389_s21, %s389_s21 }
  0x53   : > { %p1665_p5 = scmp.ne.s32.totalorder %s389_s21, %s1664_s28  ;;  %p1673_p11 = scmp.lt.s32.totalorder %s1664_s28, %s1664_s28 }
  0x55   : > { %p1667_p8 = pnand %p1665_p5, %p1941_p7  ;;  %p1674_p12 = por %p1673_p11, %p1672_p10 }
  0x56   : > { %1420 = dma.hbm_to_vmem [thread:$0]  (!%p1931_p6), %s2302_s7, 1024, %s373_s25, [#allocation12], %s2281_s13, %s2281_s13, %s2283_s14  }
  0x57   : > { %p1668_p9 = pneg %p1667_p8 }
  0x59   : > { %p1675_p0 = pnand %p1674_p12, %p1668_p9 }
  0x5b   : > { %1678 = shalt.err (!%p1675_p0)
}
  0x5c   : > { %s2303_s9 = sld [smem:[#allocation31_spill]]  ;;  %s1207_s27 = sadd.s32 4294967294, %s1819_s20  }
  0x5d   : > { %s2017_s30 = sadd.s32 1, %s1819_s20   ;;  %s40_s12 = sadd.s32 1, %s1815_s19 }
  0x5e   : > { %s37_s22 = ssub.s32 %s1819_s20, %s2017_s30  ;;  %p47_p13 = scmp.ne.s32.totalorder %s1815_s19, %s1811_s18 }
  0x5f   : > { %p38_p7 = scmp.eq.s32.totalorder %s37_s22, 0  ;;  %p48_p2 = scmp.eq.s32.totalorder %s1819_s20, 0 }
  0x60   : > { %p53_p5 = scmp.ne.s32.totalorder %s1811_s18, %s1807_s17  ;;  %p292_p9 = scmp.eq.s32.totalorder %s1917_s23, 1 }
  0x61   : > { %s2028_s15 = scalar_select %p38_p7, %s1815_s19, %s40_s12  }
  0x62   : > { %1423 = dma.hbm_to_vmem [thread:$0]  (!%p1931_p6), %s2303_s9, 1024, %s389_s21, [#allocation15], %s2281_s13, %s2281_s13, %s2283_s14  }
  0x63   : > { %2304 = sst [smem:[#allocation24_spill]] %s2028_s15  ;;  %p2030_p8 = por %p48_p2, %p47_p13 }
  0x64   : > { %p2036_p6 = por %p2285_p1, %p53_p5  ;;  %p298_p10 = scmp.eq.s32.totalorder %s1207_s27, 1 }
  0x65   : > { %p1441_p11 = scmp.lt.s32.totalorder %s1819_s20, 2  ;;  %s405_s21 = sand.u32 1, %s1815_s19  }
  0x66   : > { %s2306_s16 = scalar_select %p2036_p6, 1, 0 }
  0x67   : > { %p2043_p12 = por %p292_p9, %p47_p13  ;;  %p2047_p0 = por %p298_p10, %p53_p5 }
  0x68   : > { %s1216_s25 = sshll.u32 %s405_s21, 3  ;;  %s1270_s22 = sshll.u32 %s1819_s20, 7 }
  0x69   : > { %s2307_s28 = scalar_select %p2043_p12, 1, 0 }
  0x6a   : > { %s2308_s29 = scalar_select %p2047_p0, 1, 0 }
  0x6b   : > { %s2309_s0 = sld [smem:[#allocation25_spill]]  ;;  %s409_s27 = scalar_lea.vmem [#allocation2], %s1216_s25 }
  0x6c   : > { %s416_s2 = sshll.u32 %s409_s27, 4  ;;  %p2061_p7 = pnand %p1441_p11, %p2030_p8  ;;  %s2057_s2 = int_to_ptr.vmem [resolvable:$true] %s416_s2 }
  0x6d   : > { %s2068_s13 = scalar_lea.hbm %s2270_s1, %s1270_s22  ;;  %s430_s12 = scalar_lea.vmem [#allocation5], %s1216_s25 }
  0x6e   : > { %s2070_s7 = sshll.u32 %s430_s12, 4  ;;  %s2072_s9 = scalar_lea.sflag [#allocation3], %s405_s21  ;;  %s2103_s7 = int_to_ptr.vmem [resolvable:$true] %s2070_s7 }
  0x6f   : > { %p1681_p2 = pneg %p2061_p7 }
  0x71   : > { %s2055_s14 = scalar_lea.hbm %s2309_s0, %s1270_s22  ;;  %s1684_s5 = scalar_lea.hbm %s2309_s0, 256 }
  0x72   : > { %s1679_s27 = scalar_lea.hbm %s2055_s14, 128  ;;  %p1685_p9 = scmp.lt.s32.totalorder %s2055_s14, %s2309_s0 }
  0x73   : > { %p1680_p13 = scmp.ne.s32.totalorder %s2055_s14, %s1679_s27  ;;  %p1686_p10 = scmp.lt.s32.totalorder %s1684_s5, %s1679_s27 }
  0x75   : > { %p1682_p5 = pnand %p1681_p2, %p1680_p13  ;;  %p1687_p11 = por %p1686_p10, %p1685_p9 }
  0x77   : > { %p1683_p8 = pneg %p1682_p5 }
  0x79   : > { %p1688_p4 = pnand %p1687_p11, %p1683_p8 }
  0x7b   : > { %1691 = shalt.err (!%p1688_p4)
}
  0x7c   : > { %s1692_s21 = scalar_lea.vmem %s2057_s2, 128  ;;  %s1829_s15 = smov [#allocation2]  }
  0x7d   : > { %p1693_p1 = scmp.ne.s32.totalorder %s2057_s2, %s1692_s21  ;;  %s1697_s25 = sshll.u32 %s1829_s15, 4  ;;  %s1698_s25 = int_to_ptr.vmem [resolvable:$false] %s1697_s25 }
  0x7e   : > { %s1699_s12 = scalar_lea.vmem %s1698_s25, 256  ;;  %p1700_p0 = scmp.lt.s32.totalorder %s2057_s2, %s1698_s25 }
  0x7f   : > { %p1695_p13 = pnand %p1693_p1, %p1681_p2  ;;  %p1701_p12 = scmp.lt.s32.totalorder %s1699_s12, %s1692_s21 }
  0x81   : > { %p1696_p5 = pneg %p1695_p13  ;;  %p1702_p6 = por %p1701_p12, %p1700_p0 }
  0x83   : > { %p1703_p9 = pnand %p1702_p6, %p1696_p5 }
  0x85   : > { %1706 = shalt.err (!%p1703_p9)
}
  0x86   : > { %s2311_s27 = smov 4   ;;  %s2312_s26 = smov 64  }
  0x87   : > { %1427 = dma.hbm_to_vmem [thread:$0]  (!%p2061_p7), %s2055_s14, 128, %s2057_s2, %s2072_s9, %s2312_s26, %s2312_s26, %s2311_s27  }
  0x88   : > { %s426_s5 = sand.u32 1, %s1819_s20   ;;  %s1707_s22 = scalar_lea.hbm %s2068_s13, 128 }
  0x89   : > { %s427_s6 = scalar_lea.sflag [#allocation6], %s426_s5  ;;  %p1708_p1 = scmp.ne.s32.totalorder %s2068_s13, %s1707_s22 }
  0x8a   : > { %s1712_s25 = scalar_lea.hbm %s2270_s1, 256  ;;  %p1713_p12 = scmp.lt.s32.totalorder %s2068_s13, %s2270_s1 }
  0x8b   : > { %p1710_p4 = pnand %p1708_p1, %p1681_p2  ;;  %p1714_p0 = scmp.lt.s32.totalorder %s1712_s25, %s1707_s22 }
  0x8d   : > { %p1711_p6 = pneg %p1710_p4  ;;  %p1715_p8 = por %p1714_p0, %p1713_p12 }
  0x8f   : > { %p1716_p10 = pnand %p1715_p8, %p1711_p6 }
  0x91   : > { %1719 = shalt.err (!%p1716_p10)
}
  0x92   : > { %s1720_s2 = scalar_lea.vmem %s2103_s7, 128  ;;  %s1830_s9 = smov [#allocation5]  }
  0x93   : > { %p1721_p11 = scmp.ne.s32.totalorder %s2103_s7, %s1720_s2  ;;  %s1725_s14 = sshll.u32 %s1830_s9, 4  ;;  %s1726_s14 = int_to_ptr.vmem [resolvable:$false] %s1725_s14 }
  0x94   : > { %s1727_s5 = scalar_lea.vmem %s1726_s14, 256  ;;  %p1728_p9 = scmp.lt.s32.totalorder %s2103_s7, %s1726_s14 }
  0x95   : > { %p1723_p13 = pnand %p1721_p11, %p1681_p2  ;;  %p1729_p1 = scmp.lt.s32.totalorder %s1727_s5, %s1720_s2 }
  0x97   : > { %p1724_p5 = pneg %p1723_p13  ;;  %p1730_p4 = por %p1729_p1, %p1728_p9 }
  0x99   : > { %p1731_p12 = pnand %p1730_p4, %p1724_p5 }
  0x9b   : > { %1734 = shalt.err (!%p1731_p12)
}
  0x9c   : > { %1430 = dma.hbm_to_vmem [thread:$0]  (!%p2061_p7), %s2068_s13, 128, %s2103_s7, %s427_s6, %s2312_s26, %s2312_s26, %s2311_s27  }
  0x9d   : > { %449 = sbr.rel (%p1922_p3) target bundleno = 978 (0x3d2), region = 64  ;;  %s2134_s0 = sand.u32 (!%p1922_p3), 1, %s1811_s18  }
  0x9e   : > { %s1223_s22 = sshll.u32 (!%p1922_p3), %s2134_s0, 3  ;;  %s452_s21 = scalar_lea.sflag (!%p1922_p3), [#allocation3], %s2134_s0 }
  0x9f   : > { %s2138_s15 = scalar_lea.vmem (!%p1922_p3), [#allocation2], %s1223_s22  ;;  %p2313_p2 = scmp.ne.s32.totalorder (!%p1922_p3), %s2306_s16, 0 }
  0xa2   : > { %1778 = dma.done.wait (%p2313_p2), %s452_s21, 128  }
  0xa3   : > { %1780 = vsyncadd (%p2313_p2), %s452_s21, 4294967168  ;;  %s460_s3 = sand.u32 1, %s1917_s23   ;;  %s464_s24 = scalar_lea.vmem [#allocation5], %s1223_s22 }
  0xa4   : > { %s461_s7 = scalar_lea.sflag [#allocation6], %s460_s3 }
  0xa5   : > { %1782 = dma.done.wait (%p2313_p2), %s461_s7, 128  }
  0xa6   : > { %1784 = vsyncadd (%p2313_p2), %s461_s7, 4294967168  ;;  %p2314_p3 = scmp.eq.s32.totalorder %s1917_s23, 0 }
  0xa8   : > { %1786 = dma.done.wait (%p2314_p3), [#allocation6], 256   ;;  %p2315_p7 = pmov %p2314_p3 }
  0xa9   : > { %p2316_p6 = pmov %p2314_p3 }
  0xaa   : > { %1788 = vsyncadd (%p2315_p7), [#allocation6], 4294967040 }
  0xab   : > { %1790 = dma.done.wait (%p2316_p6), [#allocation9], 512   ;;  %p2317_p0 = pmov %p2314_p3 }
  0xad   : > { %1792 = vsyncadd (%p2317_p0), [#allocation9], 4294966784  ;;  %p2318_p8 = pmov %p2317_p0 }
  0xae   : > { %p2319_p10 = pmov %p2317_p0 }
  0xaf   : > { %1794 = dma.done.wait (%p2318_p8), [#allocation12], 1280  }
  0xb0   : > { %1796 = vsyncadd (%p2319_p10), [#allocation12], 4294966016  ;;  %p2320_p11 = pmov %p2317_p0 }
  0xb1   : > { %p2321_p13 = pmov %p2317_p0 }
  0xb2   : > { %1798 = dma.done.wait (%p2320_p11), [#allocation15], 1024  }
  0xb3   : > { %1800 = vsyncadd (%p2321_p13), [#allocation15], 4294966272  ;;  %v1831_v0 = vmov 0.0   ;;  %vm1832_vm0 = vmmov 0   ;;  %v1493_v1 = vld [vmem:[#allocation8 + $0x8] sm:$0xff]   ;;  %v1494_v2 = vld [vmem:[#allocation8] sm:$0xff]  }
  0xb4   : > { %1303 = vmatprep.subr.bf16.mxu0 %v1831_v0  ;;  %1307 = vmatprep.mubr.msk.bf16.mxu0 %vm1832_vm0, %v1831_v0  ;;  %v2172_v3 = vld [vmem:[%s464_s24] sm:$0xff]   ;;  %vm565_vm1 = vcmask 261120   ;;  %v1496_v4 = vld [vmem:[#allocation7 + $0x8] sm:$0xff]   ;;  %v1497_v5 = vld [vmem:[#allocation7] sm:$0xff]   ;;  %s1231_s6 = sshll.u32 %s2134_s0, 4  ;;  %s1272_s14 = sshll.u32 %s1917_s23, 8 }
  0xb5   : > { %1339 = vmatprep.subr.bf16.mxu1 %v1831_v0  ;;  %1343 = vmatprep.mubr.msk.bf16.mxu1 %vm1832_vm0, %v1831_v0  ;;  %v1498_v6 = vld [vmem:[%s2138_s15] sm:$0xff]   ;;  %v1499_v7 = vld [vmem:[#allocation13 + $0x38] sm:$0xff]   ;;  %v1500_v8 = vld [vmem:[#allocation13 + $0x30] sm:$0xff]   ;;  %s531_s2 = scalar_lea.vmem [#allocation16], %s1231_s6  ;;  %s2226_s21 = scalar_lea.hbm %s2280_s11, %s1272_s14 }
  0xb6   : > { %1304 = vmatpush3.bf16.msra.mxu0 %v1493_v1  ;;  %v1240_v14 = vld [vmem:[%s2273_s4] ss:$0 sm:$0xff]  ;;  %v1501_v24 = vld [vmem:[#allocation13 + $0x28] sm:$0xff]   ;;  %v1504_v27 = vld [vmem:[#allocation13 + $0x18] sm:$0xff]   ;;  %s1054_s9 = sshll.u32 %s531_s2, 4  ;;  %s1041_s15 = scalar_lea.sflag [#allocation4], %s2134_s0  ;;  %s2221_s9 = int_to_ptr.vmem [resolvable:$true] %s1054_s9 }
  0xb7   : > { %1305 = vmatprep.subr.bf16.mxu0 %v1831_v0  ;;  %v1502_v25 = vld [vmem:[#allocation13 + $0x20] sm:$0xff]   ;;  %v1503_v26 = vld [vmem:[#allocation10 + $0x8] sm:$0xff]   ;;  %v1506_v29 = vld [vmem:[#allocation13 + $0x10] sm:$0xff]   ;;  %s1735_s3 = scalar_lea.vmem %s2221_s9, 256  ;;  %p2322_p9 = scmp.ne.s32.totalorder %s2307_s28, 0 }
  0xb8   : > { %1340 = vmatpush3.bf16.msra.mxu1 %v1503_v26  ;;  %v1505_v28 = vld [vmem:[#allocation10] sm:$0xff]   ;;  %v1507_v30 = vld [vmem:[#allocation11 + $0x8] sm:$0xff]   ;;  %v1508_v31 = vld [vmem:[#allocation13 + $0x8] sm:$0xff]   ;;  %p1736_p5 = scmp.ne.s32.totalorder %s2221_s9, %s1735_s3  ;;  %s1833_s23 = smov [#allocation16]  }
  0xb9   : > { %1341 = vmatprep.subr.bf16.mxu1 %v1831_v0  ;;  %v1509_v32 = vld [vmem:[#allocation11] sm:$0xff]   ;;  %v1510_v33 = vld [vmem:[#allocation13] sm:$0xff]   ;;  %v1511_v34 = vld [vmem:[#allocation14 + $0x38] sm:$0xff]   ;;  %s1739_s7 = sshll.u32 %s1833_s23, 4  ;;  %s1740_s7 = int_to_ptr.vmem [resolvable:$false] %s1739_s7 }
  0xba   : > { %1306 = vmatpush3.bf16.msra.mxu0 %v1494_v2  ;;  %v1512_v35 = vld [vmem:[#allocation14 + $0x30] sm:$0xff]   ;;  %v1513_v36 = vld [vmem:[#allocation14 + $0x28] sm:$0xff]   ;;  %v1514_v37 = vld [vmem:[#allocation14 + $0x20] sm:$0xff]   ;;  %p1737_p1 = pnand %p1736_p5, %p2322_p9  ;;  %s1741_s24 = scalar_lea.vmem %s1740_s7, 512 }
  0xbb   : > { %1311 = vmatprep.subr.bf16.mxu0 %v1831_v0  ;;  %v1515_v52 = vld [vmem:[#allocation14 + $0x18] sm:$0xff]   ;;  %v1516_v55 = vld [vmem:[#allocation14 + $0x10] sm:$0xff]   ;;  %v1517_v57 = vld [vmem:[#allocation14 + $0x8] sm:$0xff]   ;;  %p1742_p12 = scmp.lt.s32.totalorder %s2221_s9, %s1740_s7  ;;  %p1743_p2 = scmp.lt.s32.totalorder %s1741_s24, %s1735_s3 }
  0xbc   : > { %1342 = vmatpush3.bf16.msra.mxu1 %v1505_v28  ;;  %v1518_v58 = vld [vmem:[#allocation14] sm:$0xff]   ;;  %p1738_p4 = pneg %p1737_p1 }
  0xbd   : > { %1308 = vmatmul.mubr.msk.bf16.vlgmr.msra.gmra.mxu0 %vm565_vm1, %v2172_v3  ;;  %1347 = vmatprep.subr.bf16.mxu1 %v1831_v0  ;;  %v1241_v59 = vld [vmem:[%s2277_s8] ss:$0 sm:$0xff]  ;;  %p1744_p3 = por %p1743_p2, %p1742_p12 }
  0xbe   : > { %1312 = vmatpush3.bf16.msra.mxu0 %v1496_v4  ;;  %1315 = vmatprep.mubr.msk.bf16.mxu0 %vm1832_vm0, %v1831_v0 }
  0xbf   : > { %1313 = vmatprep.subr.bf16.mxu0 %v1831_v0  ;;  %1344 = vmatmul.mubr.msk.bf16.vlgmr.msra.gmra.mxu1 %vm565_vm1, %v1498_v6  ;;  %p1745_p7 = pnand %p1744_p3, %p1738_p4 }
  0xc0   : > { %1348 = vmatpush3.bf16.msra.mxu1 %v1507_v30  ;;  %1351 = vmatprep.mubr.msk.bf16.mxu1 %vm1832_vm0, %v1831_v0 }
  0xc1   : > { %1349 = vmatprep.subr.bf16.mxu1 %v1831_v0 }
  0xc2   : > { %1314 = vmatpush3.bf16.msra.mxu0 %v1497_v5 }
  0xc3   : > { %1319 = vmatprep.subr.bf16.mxu0 %v1831_v0 }
  0xc4   : > { %1350 = vmatpush3.bf16.msra.mxu1 %v1509_v32 }
  0xc5   : > { %1316 = vmatmul.mubr.msk.bf16.vlgmr.msra.gmra.mxu0 %vm565_vm1, %v1498_v6  ;;  %1355 = vmatprep.subr.bf16.mxu1 %v1831_v0 }
  0xc6   : > { %1335 = vmatprep.mubr.msk.bf16.mxu0 %vm1832_vm0, %v1831_v0  ;;  %1320 = vmatpush3.bf16.msra.mxu0 %v1499_v7 }
  0xc7   : > { %1321 = vmatprep.subr.bf16.mxu0 %v1831_v0  ;;  %1352 = vmatmul.mubr.msk.bf16.vlgmr.msra.gmra.mxu1 %vm565_vm1, %v2172_v3 }
  0xc8   : > { %1371 = vmatprep.mubr.msk.bf16.mxu1 %vm1832_vm0, %v1831_v0  ;;  %1356 = vmatpush3.bf16.msra.mxu1 %v1511_v34 }
  0xc9   : > { %1357 = vmatprep.subr.bf16.mxu1 %v1831_v0 }
  0xca   : > { %1322 = vmatpush3.bf16.msra.mxu0 %v1500_v8 }
  0xcb   : > { %1323 = vmatprep.subr.bf16.mxu0 %v1831_v0 }
  0xcc   : > { %1358 = vmatpush3.bf16.msra.mxu1 %v1512_v35 }
  0xcd   : > { %1359 = vmatprep.subr.bf16.mxu1 %v1831_v0 }
  0xce   : > { %1324 = vmatpush3.bf16.msra.mxu0 %v1501_v24 }
  0xcf   : > { %1325 = vmatprep.subr.bf16.mxu0 %v1831_v0 }
  0xd0   : > { %1360 = vmatpush3.bf16.msra.mxu1 %v1513_v36 }
  0xd1   : > { %1361 = vmatprep.subr.bf16.mxu1 %v1831_v0 }
  0xd2   : > { %1326 = vmatpush3.bf16.msra.mxu0 %v1502_v25 }
  0xd3   : > { %1327 = vmatprep.subr.bf16.mxu0 %v1831_v0 }
  0xd4   : > { %1362 = vmatpush3.bf16.msra.mxu1 %v1514_v37 }
  0xd5   : > { %1363 = vmatprep.subr.bf16.mxu1 %v1831_v0 }
  0xd6   : > { %1328 = vmatpush3.bf16.msra.mxu0 %v1504_v27 }
  0xd7   : > { %1329 = vmatprep.subr.bf16.mxu0 %v1831_v0 }
  0xd8   : > { %1364 = vmatpush3.bf16.msra.mxu1 %v1515_v52 }
  0xd9   : > { %1365 = vmatprep.subr.bf16.mxu1 %v1831_v0 }
  0xda   : > { %1330 = vmatpush3.bf16.msra.mxu0 %v1506_v29 }
  0xdb   : > { %1331 = vmatprep.subr.bf16.mxu0 %v1831_v0 }
  0xdc   : > { %1366 = vmatpush3.bf16.msra.mxu1 %v1516_v55 }
  0xdd   : > { %1367 = vmatprep.subr.bf16.mxu1 %v1831_v0 }
  0xde   : > { %1332 = vmatpush3.bf16.msra.mxu0 %v1508_v31 }
  0xdf   : > { %1333 = vmatprep.subr.bf16.mxu0 %v1831_v0 }
  0xe0   : > { %1368 = vmatpush3.bf16.msra.mxu1 %v1517_v57 }
  0xe1   : > { %1369 = vmatprep.subr.bf16.mxu1 %v1831_v0 }
  0xe2   : > { %1334 = vmatpush3.bf16.msra.mxu0 %v1510_v33 }
  0xe4   : > { %1370 = vmatpush3.bf16.msra.mxu1 %v1518_v58 }
 0x17d   : > { %v603_v9 = vpop.f32.mrf.mxu0 }
 0x17f   : > { %v1309_v10 = vpop.f32.mrf.mxu0  ;;  %v855_v47 = vpop.f32.mrf.mxu1 }
 0x181   : > { %v606_v11 = vpop.f32.mrf.mxu0  ;;  %v1345_v48 = vpop.f32.mrf.mxu1 }
 0x183   : > { %v1310_v12 = vpop.f32.mrf.mxu0  ;;  %v858_v49 = vpop.f32.mrf.mxu1 }
 0x185   : > { %v664_v13 = vpop.f32.mrf.mxu0  ;;  %v1346_v50 = vpop.f32.mrf.mxu1 }
 0x186   : > { %v665_v15 = vadd.f32 %v664_v13, %v603_v9  ;;  %v1256_v9 = vld [vmem:[%s2279_s10] ss:$0 sm:$0xff] }
 0x187   : > { %v1317_v16 = vpop.f32.mrf.mxu0  ;;  %v914_v51 = vpop.f32.mrf.mxu1 }
 0x188   : > { %v678_v17 = vadd.f32 %v1240_v14, %v665_v15 }
 0x189   : > { %v667_v18 = vpop.f32.mrf.mxu0  ;;  %v1353_v53 = vpop.f32.mrf.mxu1 }
 0x18a   : > { %v668_v19 = vadd.f32 %v667_v18, %v606_v11  ;;  %v680_v20 = vmul.f32 %v678_v17, %v678_v17 }
 0x18b   : > { %v1318_v21 = vpop.f32.mrf.mxu0  ;;  %v917_v54 = vpop.f32.mrf.mxu1 }
 0x18c   : > { %v679_v22 = vadd.f32 %v1240_v14, %v668_v19  ;;  %682 = vadd.xlane.f32.xlu0 %v680_v20 }
 0x18d   : > { %v1354_v56 = vpop.f32.mrf.mxu1 }
 0x18e   : > { %v681_v23 = vmul.f32 %v679_v22, %v679_v22 }
 0x190   : > { %684 = vadd.xlane.f32.xlu0 %v681_v23 }
 0x215   : > { %v683_v38 = vpop.xlane.xlu0 %682 }
 0x216   : > { %v686_v39 = vmax.f32 %v683_v38, 1e-24 }
 0x218   : > { %1519 = vrsqrt.f32 %v686_v39 }
 0x219   : > { %v685_v40 = vpop.xlane.xlu0 %684 }
 0x21a   : > { %v687_v41 = vmax.f32 %v685_v40, 1e-24 }
 0x21c   : > { %1521 = vrsqrt.f32 %v687_v41 }
 0x225   : > { %v1520_v42 = vpop.eup %1519 }
 0x226   : > { %v690_v44 = vmul.f32 %v1520_v42, %v678_v17 }
 0x229   : > { %v1522_v43 = vpop.eup %1521 }
 0x22a   : > { %v691_v45 = vmul.f32 %v1522_v43, %v679_v22 }
 0x22c   : > { %v692_v46 = vpack.c.bf16 %v691_v45, %v690_v44 }
 0x22e   : > { %1336 = vmatmul.mubr.bf16.vlgmr.msra.gmra.mxu0 %v692_v46 }
 0x2ee   : > { %v798_v60 = vpop.f32.mrf.mxu0 }
 0x2ef   : > { %v799_v61 = vadd.f32 %v1241_v59, %v798_v60 }
 0x2f0   : > { %v1337_v62 = vpop.f32.mrf.mxu0 }
 0x2f1   : > { %v862_v63 = vadd.f32 %v855_v47, %v799_v61 }
 0x2f2   : > { %v801_v1 = vpop.f32.mrf.mxu0 }
 0x2f3   : > { %v802_v2 = vadd.f32 %v1241_v59, %v801_v1  ;;  %v921_v4 = vadd.f32 %v914_v51, %v862_v63 }
 0x2f4   : > { %v1338_v3 = vpop.f32.mrf.mxu0 }
 0x2f5   : > { %v863_v5 = vadd.f32 %v858_v49, %v802_v2  ;;  %v923_v7 = vmax.f32 %v921_v4, 0.0 }
 0x2f7   : > { %v922_v6 = vadd.f32 %v917_v54, %v863_v5 }
 0x2f9   : > { %v924_v0 = vmax.f32 %v922_v6, 0.0 }
 0x2fb   : > { %v925_v8 = vpack.c.bf16 %v924_v0, %v923_v7 }
 0x2fd   : > { %1372 = vmatmul.mubr.bf16.vlgmr.msra.gmra.mxu1 %v925_v8 }
 0x3bd   : > { %v1031_v10 = vpop.f32.mrf.mxu1 }
 0x3be   : > { %v1032_v11 = vadd.f32 %v1256_v9, %v1031_v10 }
 0x3bf   : > { %v1373_v12 = vpop.f32.mrf.mxu1 }
 0x3c0   : > { %1038 = vst [vmem:[%s531_s2] sm:$0xff] %v1032_v11 }
 0x3c1   : > { %v1034_v13 = vpop.f32.mrf.mxu1 }
 0x3c2   : > { %v1035_v14 = vadd.f32 %v1256_v9, %v1034_v13 }
 0x3c3   : > { %v1374_v15 = vpop.f32.mrf.mxu1 }
 0x3c4   : > { %1039 = vst [vmem:[%s531_s2 + $0x8] sm:$0xff] %v1035_v14 }
 0x3c5   : > { %1748 = shalt.err (!%p1745_p7)
}
 0x3c6   : > { %s1749_s16 = scalar_lea.hbm %s2226_s21, 256  ;;  %s1753_s26 = scalar_lea.hbm %s2280_s11, 512 }
 0x3c7   : > { %p1750_p6 = scmp.ne.s32.totalorder %s2226_s21, %s1749_s16  ;;  %p1754_p10 = scmp.lt.s32.totalorder %s2226_s21, %s2280_s11 }
 0x3c8   : > { %p1755_p11 = scmp.lt.s32.totalorder %s1753_s26, %s1749_s16 }
 0x3c9   : > { %p1751_p0 = pnand %p1750_p6, %p2322_p9 }
 0x3ca   : > { %p1756_p13 = por %p1755_p11, %p1754_p10 }
 0x3cb   : > { %p1752_p8 = pneg %p1751_p0 }
 0x3cd   : > { %p1757_p5 = pnand %p1756_p13, %p1752_p8 }
 0x3cf   : > { %1760 = shalt.err (!%p1757_p5)
}
 0x3d0   : > { %s1834_s12 = smov 128   ;;  %s1835_s2 = smov 8  }
 0x3d1   : > { %1403 = dma.vmem_to_hbm [thread:$0]  (%p2322_p9), %s2221_s9, 256, %s2226_s21, %s1041_s15, %s1834_s12, %s1834_s12, %s1835_s2  }
 0x3d2 PF: > { %s1069_s14 = sand.u32 1, %s1807_s17   ;;  %p2323_p1 = scmp.ne.s32.totalorder %s2308_s29, 0 }
 0x3d3   : > { %p2324_p4 = scmp.ge.s32.totalorder %s1819_s20, 2  ;;  %s1070_s5 = scalar_lea.sflag [#allocation4], %s1069_s14 }
 0x3d5   : > { %p1432_p12 = pnand %p2324_p4, %p2323_p1 }
 0x3d7   : > { %p1433_p2 = pneg %p1432_p12 }
 0x3d9   : > { %1802 = dma.done.wait (%p1433_p2), %s1070_s5, 256  }
 0x3da   : > { %1804 = vsyncadd (%p1433_p2), %s1070_s5, 4294967040  ;;  %s2325_s22 = sld [smem:[#allocation24_spill]]  ;;  %p30_p3 = scmp.ge.s32.totalorder %s2017_s30, 4  }
 0x3db   : > { %s2326_s17 = smov %s1811_s18  ;;  %s2327_s18 = smov %s1815_s19 }
 0x3dc   : > { %s2329_s20 = smov %s2017_s30  ;;  %32 = sbr.rel (!%p30_p3) target bundleno = 18 (0x12), region = 146 }
 0x3e0   : > { %s2328_s19 = smov %s2325_s22 }
 0x3e1   :  { %1075 = vsyncpa [#allocation3], 1 }
 0x3e2   :  { %1077 = vsyncpa [#allocation3 + $0x1], 1 }
 0x3e3   :  { %1078 = vsyncpa [#allocation6], 1 }
 0x3e4   :  { %1080 = vsyncpa [#allocation6 + $0x1], 1 }
 0x3e5   :  { %1081 = vsyncpa [#allocation9], 1 }
 0x3e6   :  { %1082 = vsyncpa [#allocation12], 1 }
 0x3e7   :  { %1083 = vsyncpa [#allocation15], 1 }
 0x3e8   :  { %1084 = vsyncpa [#allocation4], 1 }
 0x3e9   :  { %1086 = vsyncpa [#allocation4 + $0x1], 1 }

// kernel: tpu_custom_call.1
= control target key start
LH: loop header
LB: loop body
LE: loop exit
PB: predicated region body
PF: predicated region fallthrough
CT: control target
= control target key end

     0   :  { %s2269_s0 = inlined_call_operand.hbm [shape: bf16[32,32], index: 0, kind: input, shape index: {}]   ;;  %s2270_s1 = inlined_call_operand.hbm [shape: bf16[32,32], index: 1, kind: input, shape index: {}]   ;;  %s2271_s2 = inlined_call_operand.hbm [shape: bf16[32,128], index: 2, kind: input, shape index: {}]   ;;  %s2272_s3 = inlined_call_operand.hbm [shape: bf16[32,128], index: 3, kind: input, shape index: {}]   ;;  %s2273_s4 = inlined_call_operand.vmem [shape: f32[1,128], index: 4, kind: input, shape index: {}]   ;;  %s2274_s5 = inlined_call_operand.hbm [shape: bf16[32,128], index: 5, kind: input, shape index: {}]   ;;  %s2275_s6 = inlined_call_operand.hbm [shape: bf16[32,128], index: 6, kind: input, shape index: {}]   ;;  %s2276_s7 = inlined_call_operand.hbm [shape: bf16[128,128], index: 7, kind: input, shape index: {}]   ;;  %s2277_s8 = inlined_call_operand.vmem [shape: f32[1,128], index: 8, kind: input, shape index: {}]   ;;  %s2278_s9 = inlined_call_operand.hbm [shape: bf16[128,128], index: 9, kind: input, shape index: {}]   ;;  %s2279_s10 = inlined_call_operand.vmem [shape: f32[1,128], index: 10, kind: input, shape index: {}]   ;;  %s2280_s11 = inlined_call_operand.hbm [shape: f32[32,128], index: 11, kind: output, shape index: {}]  }
   0x1   :  { %2288 = sst [smem:[#allocation25_spill]] %s2269_s0 }
   0x2   :  { %2289 = sst [smem:[#allocation26_spill]] %s2271_s2 }
   0x3   :  { %2290 = sst [smem:[#allocation27_spill]] %s2272_s3 }
   0x4   :  { %2291 = sst [smem:[#allocation28_spill]] %s2274_s5 }
   0x5   :  { %2292 = sst [smem:[#allocation29_spill]] %s2275_s6 }
   0x6   :  { %2293 = sst [smem:[#allocation30_spill]] %s2276_s7 }
   0x7   :  { %2294 = sst [smem:[#allocation31_spill]] %s2278_s9 }
   0x8   :  { %16 = vsyncpa [#allocation3], 0 }
   0x9   :  { %18 = vsyncpa [#allocation3 + $0x1], 0 }
   0xa   :  { %19 = vsyncpa [#allocation6], 0 }
   0xb   :  { %21 = vsyncpa [#allocation6 + $0x1], 0 }
   0xc   :  { %22 = vsyncpa [#allocation9], 0 }
   0xd   :  { %23 = vsyncpa [#allocation12], 0 }
   0xe   :  { %24 = vsyncpa [#allocation15], 0 }
   0xf   :  { %25 = vsyncpa [#allocation4], 0 }
  0x10   :  { %27 = vsyncpa [#allocation4 + $0x1], 0  ;;  %s1896_s17 = smov 0   ;;  %s1898_s18 = smov 0  }
  0x11   :  { %s1900_s19 = smov 0   ;;  %s1902_s20 = smov 0  }
  0x12 LB: > { %s1821_s21 = smov [#allocation7]   ;;  %s1917_s23 = sadd.s32 4294967295, %s1819_s20   ;;  %s1819_s20 = sphi %s1902_s20, %s2329_s20   ;;  %s1815_s19 = sphi %s1900_s19, %s2328_s19   ;;  %s1811_s18 = sphi %s1898_s18, %s2327_s18   ;;  %s1807_s17 = sphi %s1896_s17, %s2326_s17  }
  0x13   : > { %s317_s22 = sshll.u32 %s1821_s21, 4  ;;  %p1208_p0 = scmp.ge.s32.totalorder %s1819_s20, 1  ;;  %s318_s22 = int_to_ptr.vmem [resolvable:$true] %s317_s22 }
  0x14   : > { %p2285_p1 = scmp.eq.s32.totalorder %s1917_s23, 0  ;;  %p305_p2 = scmp.lt.s32.totalorder %s1819_s20, 3 }
  0x15   : > { %s1822_s25 = smov [#allocation8]   ;;  %s1823_s28 = smov [#allocation11]  }
  0x16   : > { %p1922_p3 = pnand %p1208_p0, %p305_p2  ;;  %s330_s26 = sshll.u32 %s1822_s25, 4  ;;  %s1935_s26 = int_to_ptr.vmem [resolvable:$true] %s330_s26 }
  0x17   : > { %s359_s29 = sshll.u32 %s1823_s28, 4  ;;  %s1534_s12 = scalar_lea.vmem %s318_s22, 256  ;;  %s1937_s29 = int_to_ptr.vmem [resolvable:$true] %s359_s29 }
  0x18   : > { %p1405_p5 = pneg %p1922_p3  ;;  %p1535_p8 = scmp.ne.s32.totalorder %s318_s22, %s1534_s12 }
  0x19   : > { %p1542_p11 = scmp.lt.s32.totalorder %s318_s22, %s318_s22  ;;  %p1543_p12 = scmp.lt.s32.totalorder %s1534_s12, %s1534_s12 }
  0x1a   : > { %p1931_p6 = pnand %p1405_p5, %p2285_p1 }
  0x1b   : > { %p1544_p13 = por %p1543_p12, %p1542_p11 }
  0x1c   : > { %p1941_p7 = pneg %p1931_p6 }
  0x1e   : > { %p1537_p9 = pnand %p1535_p8, %p1941_p7 }
  0x20   : > { %p1538_p10 = pneg %p1537_p9 }
  0x22   : > { %p1545_p0 = pnand %p1544_p13, %p1538_p10 }
  0x24   : > { %1548 = shalt.err (!%p1545_p0)
}
  0x25   : > { %s2281_s13 = smov 64   ;;  %s2283_s14 = smov 4  }
  0x26   : > { %s2298_s2 = sld [smem:[#allocation26_spill]]  ;;  %s1560_s21 = scalar_lea.vmem %s1935_s26, 256 }
  0x27   : > { %p1561_p2 = scmp.ne.s32.totalorder %s1935_s26, %s1560_s21  ;;  %p1568_p9 = scmp.lt.s32.totalorder %s1935_s26, %s1935_s26 }
  0x28   : > { %p1569_p10 = scmp.lt.s32.totalorder %s1560_s21, %s1560_s21 }
  0x29   : > { %p1563_p5 = pnand %p1561_p2, %p1941_p7 }
  0x2a   : > { %p1570_p11 = por %p1569_p10, %p1568_p9 }
  0x2b   : > { %p1564_p8 = pneg %p1563_p5 }
  0x2c   : > { %1408 = dma.hbm_to_vmem [thread:$0]  (!%p1931_p6), %s2298_s2, 256, %s318_s22, [#allocation6], %s2281_s13, %s2281_s13, %s2283_s14  }
  0x2d   : > { %p1571_p12 = pnand %p1570_p11, %p1564_p8 }
  0x2f   : > { %1574 = shalt.err (!%p1571_p12)
}
  0x30   : > { %s2299_s3 = sld [smem:[#allocation27_spill]]  ;;  %s1586_s22 = scalar_lea.vmem %s1937_s29, 256 }
  0x31   : > { %p1587_p13 = scmp.ne.s32.totalorder %s1937_s29, %s1586_s22  ;;  %p1594_p5 = scmp.lt.s32.totalorder %s1937_s29, %s1937_s29 }
  0x32   : > { %p1595_p8 = scmp.lt.s32.totalorder %s1586_s22, %s1586_s22 }
  0x33   : > { %p1589_p0 = pnand %p1587_p13, %p1941_p7 }
  0x34   : > { %p1596_p9 = por %p1595_p8, %p1594_p5 }
  0x35   : > { %p1590_p2 = pneg %p1589_p0 }
  0x36   : > { %1411 = dma.hbm_to_vmem [thread:$0]  (!%p1931_p6), %s2299_s3, 256, %s1935_s26, [#allocation9], %s2281_s13, %s2281_s13, %s2283_s14  }
  0x37   : > { %p1597_p10 = pnand %p1596_p9, %p1590_p2 }
  0x39   : > { %1600 = shalt.err (!%p1597_p10)
}
  0x3a   : > { %s2300_s6 = sld [smem:[#allocation29_spill]]  ;;  %s1826_s26 = smov [#allocation10]  }
  0x3b   : > { %s346_s16 = sshll.u32 %s1826_s26, 4  ;;  %s1827_s21 = smov [#allocation13]   ;;  %s347_s16 = int_to_ptr.vmem [resolvable:$true] %s346_s16 }
  0x3c   : > { %s372_s25 = sshll.u32 %s1827_s21, 4  ;;  %s1612_s28 = scalar_lea.vmem %s347_s16, 256  ;;  %s373_s25 = int_to_ptr.vmem [resolvable:$true] %s372_s25 }
  0x3d   : > { %p1613_p11 = scmp.ne.s32.totalorder %s347_s16, %s1612_s28  ;;  %p1620_p0 = scmp.lt.s32.totalorder %s347_s16, %s347_s16 }
  0x3e   : > { %p1621_p2 = scmp.lt.s32.totalorder %s1612_s28, %s1612_s28 }
  0x3f   : > { %p1615_p12 = pnand %p1613_p11, %p1941_p7 }
  0x40   : > { %1417 = dma.hbm_to_vmem [thread:$0]  (!%p1931_p6), %s2300_s6, 256, %s1937_s29, [#allocation12], %s2281_s13, %s2281_s13, %s2283_s14  }
  0x41   : > { %p1616_p13 = pneg %p1615_p12  ;;  %p1622_p5 = por %p1621_p2, %p1620_p0 }
  0x43   : > { %p1623_p8 = pnand %p1622_p5, %p1616_p13 }
  0x45   : > { %1626 = shalt.err (!%p1623_p8)
}
  0x46   : > { %s2301_s5 = sld [smem:[#allocation28_spill]]  ;;  %s1638_s12 = scalar_lea.vmem %s373_s25, 1024 }
  0x47   : > { %p1639_p9 = scmp.ne.s32.totalorder %s373_s25, %s1638_s12  ;;  %p1646_p12 = scmp.lt.s32.totalorder %s373_s25, %s373_s25 }
  0x48   : > { %p1647_p0 = scmp.lt.s32.totalorder %s1638_s12, %s1638_s12 }
  0x49   : > { %p1641_p10 = pnand %p1639_p9, %p1941_p7 }
  0x4a   : > { %p1648_p13 = por %p1647_p0, %p1646_p12 }
  0x4b   : > { %p1642_p11 = pneg %p1641_p10 }
  0x4c   : > { %1414 = dma.hbm_to_vmem [thread:$0]  (!%p1931_p6), %s2301_s5, 256, %s347_s16, [#allocation9], %s2281_s13, %s2281_s13, %s2283_s14  }
  0x4d   : > { %p1649_p2 = pnand %p1648_p13, %p1642_p11 }
  0x4f   : > { %1652 = shalt.err (!%p1649_p2)
}
  0x50   : > { %s2302_s7 = sld [smem:[#allocation30_spill]]  ;;  %s1828_s16 = smov [#allocation14]  }
  0x51   : > { %s388_s21 = sshll.u32 %s1828_s16, 4  ;;  %s389_s21 = int_to_ptr.vmem [resolvable:$true] %s388_s21 }
  0x52   : > { %s1664_s28 = scalar_lea.vmem %s389_s21, 1024  ;;  %p1672_p10 = scmp.lt.s32.totalorder %s389_s21, %s389_s21 }
  0x53   : > { %p1665_p5 = scmp.ne.s32.totalorder %s389_s21, %s1664_s28  ;;  %p1673_p11 = scmp.lt.s32.totalorder %s1664_s28, %s1664_s28 }
  0x55   : > { %p1667_p8 = pnand %p1665_p5, %p1941_p7  ;;  %p1674_p12 = por %p1673_p11, %p1672_p10 }
  0x56   : > { %1420 = dma.hbm_to_vmem [thread:$0]  (!%p1931_p6), %s2302_s7, 1024, %s373_s25, [#allocation12], %s2281_s13, %s2281_s13, %s2283_s14  }
  0x57   : > { %p1668_p9 = pneg %p1667_p8 }
  0x59   : > { %p1675_p0 = pnand %p1674_p12, %p1668_p9 }
  0x5b   : > { %1678 = shalt.err (!%p1675_p0)
}
  0x5c   : > { %s2303_s9 = sld [smem:[#allocation31_spill]]  ;;  %s1207_s27 = sadd.s32 4294967294, %s1819_s20  }
  0x5d   : > { %s2017_s30 = sadd.s32 1, %s1819_s20   ;;  %s40_s12 = sadd.s32 1, %s1815_s19 }
  0x5e   : > { %s37_s22 = ssub.s32 %s1819_s20, %s2017_s30  ;;  %p47_p13 = scmp.ne.s32.totalorder %s1815_s19, %s1811_s18 }
  0x5f   : > { %p38_p7 = scmp.eq.s32.totalorder %s37_s22, 0  ;;  %p48_p2 = scmp.eq.s32.totalorder %s1819_s20, 0 }
  0x60   : > { %p53_p5 = scmp.ne.s32.totalorder %s1811_s18, %s1807_s17  ;;  %p292_p9 = scmp.eq.s32.totalorder %s1917_s23, 1 }
  0x61   : > { %s2028_s15 = scalar_select %p38_p7, %s1815_s19, %s40_s12  }
  0x62   : > { %1423 = dma.hbm_to_vmem [thread:$0]  (!%p1931_p6), %s2303_s9, 1024, %s389_s21, [#allocation15], %s2281_s13, %s2281_s13, %s2283_s14  }
  0x63   : > { %2304 = sst [smem:[#allocation24_spill]] %s2028_s15  ;;  %p2030_p8 = por %p48_p2, %p47_p13 }
  0x64   : > { %p2036_p6 = por %p2285_p1, %p53_p5  ;;  %p298_p10 = scmp.eq.s32.totalorder %s1207_s27, 1 }
  0x65   : > { %p1441_p11 = scmp.lt.s32.totalorder %s1819_s20, 2  ;;  %s405_s21 = sand.u32 1, %s1815_s19  }
  0x66   : > { %s2306_s16 = scalar_select %p2036_p6, 1, 0 }
  0x67   : > { %p2043_p12 = por %p292_p9, %p47_p13  ;;  %p2047_p0 = por %p298_p10, %p53_p5 }
  0x68   : > { %s1216_s25 = sshll.u32 %s405_s21, 3  ;;  %s1270_s22 = sshll.u32 %s1819_s20, 7 }
  0x69   : > { %s2307_s28 = scalar_select %p2043_p12, 1, 0 }
  0x6a   : > { %s2308_s29 = scalar_select %p2047_p0, 1, 0 }
  0x6b   : > { %s2309_s0 = sld [smem:[#allocation25_spill]]  ;;  %s409_s27 = scalar_lea.vmem [#allocation2], %s1216_s25 }
  0x6c   : > { %s416_s2 = sshll.u32 %s409_s27, 4  ;;  %p2061_p7 = pnand %p1441_p11, %p2030_p8  ;;  %s2057_s2 = int_to_ptr.vmem [resolvable:$true] %s416_s2 }
  0x6d   : > { %s2068_s13 = scalar_lea.hbm %s2270_s1, %s1270_s22  ;;  %s430_s12 = scalar_lea.vmem [#allocation5], %s1216_s25 }
  0x6e   : > { %s2070_s7 = sshll.u32 %s430_s12, 4  ;;  %s2072_s9 = scalar_lea.sflag [#allocation3], %s405_s21  ;;  %s2103_s7 = int_to_ptr.vmem [resolvable:$true] %s2070_s7 }
  0x6f   : > { %p1681_p2 = pneg %p2061_p7 }
  0x71   : > { %s2055_s14 = scalar_lea.hbm %s2309_s0, %s1270_s22  ;;  %s1684_s5 = scalar_lea.hbm %s2309_s0, 256 }
  0x72   : > { %s1679_s27 = scalar_lea.hbm %s2055_s14, 128  ;;  %p1685_p9 = scmp.lt.s32.totalorder %s2055_s14, %s2309_s0 }
  0x73   : > { %p1680_p13 = scmp.ne.s32.totalorder %s2055_s14, %s1679_s27  ;;  %p1686_p10 = scmp.lt.s32.totalorder %s1684_s5, %s1679_s27 }
  0x75   : > { %p1682_p5 = pnand %p1681_p2, %p1680_p13  ;;  %p1687_p11 = por %p1686_p10, %p1685_p9 }
  0x77   : > { %p1683_p8 = pneg %p1682_p5 }
  0x79   : > { %p1688_p4 = pnand %p1687_p11, %p1683_p8 }
  0x7b   : > { %1691 = shalt.err (!%p1688_p4)
}
  0x7c   : > { %s1692_s21 = scalar_lea.vmem %s2057_s2, 128  ;;  %s1829_s15 = smov [#allocation2]  }
  0x7d   : > { %p1693_p1 = scmp.ne.s32.totalorder %s2057_s2, %s1692_s21  ;;  %s1697_s25 = sshll.u32 %s1829_s15, 4  ;;  %s1698_s25 = int_to_ptr.vmem [resolvable:$false] %s1697_s25 }
  0x7e   : > { %s1699_s12 = scalar_lea.vmem %s1698_s25, 256  ;;  %p1700_p0 = scmp.lt.s32.totalorder %s2057_s2, %s1698_s25 }
  0x7f   : > { %p1695_p13 = pnand %p1693_p1, %p1681_p2  ;;  %p1701_p12 = scmp.lt.s32.totalorder %s1699_s12, %s1692_s21 }
  0x81   : > { %p1696_p5 = pneg %p1695_p13  ;;  %p1702_p6 = por %p1701_p12, %p1700_p0 }
  0x83   : > { %p1703_p9 = pnand %p1702_p6, %p1696_p5 }
  0x85   : > { %1706 = shalt.err (!%p1703_p9)
}
  0x86   : > { %s2311_s27 = smov 4   ;;  %s2312_s26 = smov 64  }
  0x87   : > { %1427 = dma.hbm_to_vmem [thread:$0]  (!%p2061_p7), %s2055_s14, 128, %s2057_s2, %s2072_s9, %s2312_s26, %s2312_s26, %s2311_s27  }
  0x88   : > { %s426_s5 = sand.u32 1, %s1819_s20   ;;  %s1707_s22 = scalar_lea.hbm %s2068_s13, 128 }
  0x89   : > { %s427_s6 = scalar_lea.sflag [#allocation6], %s426_s5  ;;  %p1708_p1 = scmp.ne.s32.totalorder %s2068_s13, %s1707_s22 }
  0x8a   : > { %s1712_s25 = scalar_lea.hbm %s2270_s1, 256  ;;  %p1713_p12 = scmp.lt.s32.totalorder %s2068_s13, %s2270_s1 }
  0x8b   : > { %p1710_p4 = pnand %p1708_p1, %p1681_p2  ;;  %p1714_p0 = scmp.lt.s32.totalorder %s1712_s25, %s1707_s22 }
  0x8d   : > { %p1711_p6 = pneg %p1710_p4  ;;  %p1715_p8 = por %p1714_p0, %p1713_p12 }
  0x8f   : > { %p1716_p10 = pnand %p1715_p8, %p1711_p6 }
  0x91   : > { %1719 = shalt.err (!%p1716_p10)
}
  0x92   : > { %s1720_s2 = scalar_lea.vmem %s2103_s7, 128  ;;  %s1830_s9 = smov [#allocation5]  }
  0x93   : > { %p1721_p11 = scmp.ne.s32.totalorder %s2103_s7, %s1720_s2  ;;  %s1725_s14 = sshll.u32 %s1830_s9, 4  ;;  %s1726_s14 = int_to_ptr.vmem [resolvable:$false] %s1725_s14 }
  0x94   : > { %s1727_s5 = scalar_lea.vmem %s1726_s14, 256  ;;  %p1728_p9 = scmp.lt.s32.totalorder %s2103_s7, %s1726_s14 }
  0x95   : > { %p1723_p13 = pnand %p1721_p11, %p1681_p2  ;;  %p1729_p1 = scmp.lt.s32.totalorder %s1727_s5, %s1720_s2 }
  0x97   : > { %p1724_p5 = pneg %p1723_p13  ;;  %p1730_p4 = por %p1729_p1, %p1728_p9 }
  0x99   : > { %p1731_p12 = pnand %p1730_p4, %p1724_p5 }
  0x9b   : > { %1734 = shalt.err (!%p1731_p12)
}
  0x9c   : > { %1430 = dma.hbm_to_vmem [thread:$0]  (!%p2061_p7), %s2068_s13, 128, %s2103_s7, %s427_s6, %s2312_s26, %s2312_s26, %s2311_s27  }
  0x9d   : > { %449 = sbr.rel (%p1922_p3) target bundleno = 978 (0x3d2), region = 64  ;;  %s2134_s0 = sand.u32 (!%p1922_p3), 1, %s1811_s18  }
  0x9e   : > { %s1223_s22 = sshll.u32 (!%p1922_p3), %s2134_s0, 3  ;;  %s452_s21 = scalar_lea.sflag (!%p1922_p3), [#allocation3], %s2134_s0 }
  0x9f   : > { %s2138_s15 = scalar_lea.vmem (!%p1922_p3), [#allocation2], %s1223_s22  ;;  %p2313_p2 = scmp.ne.s32.totalorder (!%p1922_p3), %s2306_s16, 0 }
  0xa2   : > { %1778 = dma.done.wait (%p2313_p2), %s452_s21, 128  }
  0xa3   : > { %1780 = vsyncadd (%p2313_p2), %s452_s21, 4294967168  ;;  %s460_s3 = sand.u32 1, %s1917_s23   ;;  %s464_s24 = scalar_lea.vmem [#allocation5], %s1223_s22 }
  0xa4   : > { %s461_s7 = scalar_lea.sflag [#allocation6], %s460_s3 }
  0xa5   : > { %1782 = dma.done.wait (%p2313_p2), %s461_s7, 128  }
  0xa6   : > { %1784 = vsyncadd (%p2313_p2), %s461_s7, 4294967168  ;;  %p2314_p3 = scmp.eq.s32.totalorder %s1917_s23, 0 }
  0xa8   : > { %1786 = dma.done.wait (%p2314_p3), [#allocation6], 256   ;;  %p2315_p7 = pmov %p2314_p3 }
  0xa9   : > { %p2316_p6 = pmov %p2314_p3 }
  0xaa   : > { %1788 = vsyncadd (%p2315_p7), [#allocation6], 4294967040 }
  0xab   : > { %1790 = dma.done.wait (%p2316_p6), [#allocation9], 512   ;;  %p2317_p0 = pmov %p2314_p3 }
  0xad   : > { %1792 = vsyncadd (%p2317_p0), [#allocation9], 4294966784  ;;  %p2318_p8 = pmov %p2317_p0 }
  0xae   : > { %p2319_p10 = pmov %p2317_p0 }
  0xaf   : > { %1794 = dma.done.wait (%p2318_p8), [#allocation12], 1280  }
  0xb0   : > { %1796 = vsyncadd (%p2319_p10), [#allocation12], 4294966016  ;;  %p2320_p11 = pmov %p2317_p0 }
  0xb1   : > { %p2321_p13 = pmov %p2317_p0 }
  0xb2   : > { %1798 = dma.done.wait (%p2320_p11), [#allocation15], 1024  }
  0xb3   : > { %1800 = vsyncadd (%p2321_p13), [#allocation15], 4294966272  ;;  %v1831_v0 = vmov 0.0   ;;  %vm1832_vm0 = vmmov 0   ;;  %v1493_v1 = vld [vmem:[#allocation8 + $0x8] sm:$0xff]   ;;  %v1494_v2 = vld [vmem:[#allocation8] sm:$0xff]  }
  0xb4   : > { %1303 = vmatprep.subr.bf16.mxu0 %v1831_v0  ;;  %1307 = vmatprep.mubr.msk.bf16.mxu0 %vm1832_vm0, %v1831_v0  ;;  %v2172_v3 = vld [vmem:[%s464_s24] sm:$0xff]   ;;  %vm565_vm1 = vcmask 261120   ;;  %v1496_v4 = vld [vmem:[#allocation7 + $0x8] sm:$0xff]   ;;  %v1497_v5 = vld [vmem:[#allocation7] sm:$0xff]   ;;  %s1231_s6 = sshll.u32 %s2134_s0, 4  ;;  %s1272_s14 = sshll.u32 %s1917_s23, 8 }
  0xb5   : > { %1339 = vmatprep.subr.bf16.mxu1 %v1831_v0  ;;  %1343 = vmatprep.mubr.msk.bf16.mxu1 %vm1832_vm0, %v1831_v0  ;;  %v1498_v6 = vld [vmem:[%s2138_s15] sm:$0xff]   ;;  %v1499_v7 = vld [vmem:[#allocation13 + $0x38] sm:$0xff]   ;;  %v1500_v8 = vld [vmem:[#allocation13 + $0x30] sm:$0xff]   ;;  %s531_s2 = scalar_lea.vmem [#allocation16], %s1231_s6  ;;  %s2226_s21 = scalar_lea.hbm %s2280_s11, %s1272_s14 }
  0xb6   : > { %1304 = vmatpush3.bf16.msra.mxu0 %v1493_v1  ;;  %v1240_v14 = vld [vmem:[%s2273_s4] ss:$0 sm:$0xff]  ;;  %v1501_v24 = vld [vmem:[#allocation13 + $0x28] sm:$0xff]   ;;  %v1504_v27 = vld [vmem:[#allocation13 + $0x18] sm:$0xff]   ;;  %s1054_s9 = sshll.u32 %s531_s2, 4  ;;  %s1041_s15 = scalar_lea.sflag [#allocation4], %s2134_s0  ;;  %s2221_s9 = int_to_ptr.vmem [resolvable:$true] %s1054_s9 }
  0xb7   : > { %1305 = vmatprep.subr.bf16.mxu0 %v1831_v0  ;;  %v1502_v25 = vld [vmem:[#allocation13 + $0x20] sm:$0xff]   ;;  %v1503_v26 = vld [vmem:[#allocation10 + $0x8] sm:$0xff]   ;;  %v1506_v29 = vld [vmem:[#allocation13 + $0x10] sm:$0xff]   ;;  %s1735_s3 = scalar_lea.vmem %s2221_s9, 256  ;;  %p2322_p9 = scmp.ne.s32.totalorder %s2307_s28, 0 }
  0xb8   : > { %1340 = vmatpush3.bf16.msra.mxu1 %v1503_v26  ;;  %v1505_v28 = vld [vmem:[#allocation10] sm:$0xff]   ;;  %v1507_v30 = vld [vmem:[#allocation11 + $0x8] sm:$0xff]   ;;  %v1508_v31 = vld [vmem:[#allocation13 + $0x8] sm:$0xff]   ;;  %p1736_p5 = scmp.ne.s32.totalorder %s2221_s9, %s1735_s3  ;;  %s1833_s23 = smov [#allocation16]  }
  0xb9   : > { %1341 = vmatprep.subr.bf16.mxu1 %v1831_v0  ;;  %v1509_v32 = vld [vmem:[#allocation11] sm:$0xff]   ;;  %v1510_v33 = vld [vmem:[#allocation13] sm:$0xff]   ;;  %v1511_v34 = vld [vmem:[#allocation14 + $0x38] sm:$0xff]   ;;  %s1739_s7 = sshll.u32 %s1833_s23, 4  ;;  %s1740_s7 = int_to_ptr.vmem [resolvable:$false] %s1739_s7 }
  0xba   : > { %1306 = vmatpush3.bf16.msra.mxu0 %v1494_v2  ;;  %v1512_v35 = vld [vmem:[#allocation14 + $0x30] sm:$0xff]   ;;  %v1513_v36 = vld [vmem:[#allocation14 + $0x28] sm:$0xff]   ;;  %v1514_v37 = vld [vmem:[#allocation14 + $0x20] sm:$0xff]   ;;  %p1737_p1 = pnand %p1736_p5, %p2322_p9  ;;  %s1741_s24 = scalar_lea.vmem %s1740_s7, 512 }
  0xbb   : > { %1311 = vmatprep.subr.bf16.mxu0 %v1831_v0  ;;  %v1515_v52 = vld [vmem:[#allocation14 + $0x18] sm:$0xff]   ;;  %v1516_v55 = vld [vmem:[#allocation14 + $0x10] sm:$0xff]   ;;  %v1517_v57 = vld [vmem:[#allocation14 + $0x8] sm:$0xff]   ;;  %p1742_p12 = scmp.lt.s32.totalorder %s2221_s9, %s1740_s7  ;;  %p1743_p2 = scmp.lt.s32.totalorder %s1741_s24, %s1735_s3 }
  0xbc   : > { %1342 = vmatpush3.bf16.msra.mxu1 %v1505_v28  ;;  %v1518_v58 = vld [vmem:[#allocation14] sm:$0xff]   ;;  %p1738_p4 = pneg %p1737_p1 }
  0xbd   : > { %1308 = vmatmul.mubr.msk.bf16.vlgmr.msra.gmra.mxu0 %vm565_vm1, %v2172_v3  ;;  %1347 = vmatprep.subr.bf16.mxu1 %v1831_v0  ;;  %v1241_v59 = vld [vmem:[%s2277_s8] ss:$0 sm:$0xff]  ;;  %p1744_p3 = por %p1743_p2, %p1742_p12 }
  0xbe   : > { %1312 = vmatpush3.bf16.msra.mxu0 %v1496_v4  ;;  %1315 = vmatprep.mubr.msk.bf16.mxu0 %vm1832_vm0, %v1831_v0 }
  0xbf   : > { %1313 = vmatprep.subr.bf16.mxu0 %v1831_v0  ;;  %1344 = vmatmul.mubr.msk.bf16.vlgmr.msra.gmra.mxu1 %vm565_vm1, %v1498_v6  ;;  %p1745_p7 = pnand %p1744_p3, %p1738_p4 }
  0xc0   : > { %1348 = vmatpush3.bf16.msra.mxu1 %v1507_v30  ;;  %1351 = vmatprep.mubr.msk.bf16.mxu1 %vm1832_vm0, %v1831_v0 }
  0xc1   : > { %1349 = vmatprep.subr.bf16.mxu1 %v1831_v0 }
  0xc2   : > { %1314 = vmatpush3.bf16.msra.mxu0 %v1497_v5 }
  0xc3   : > { %1319 = vmatprep.subr.bf16.mxu0 %v1831_v0 }
  0xc4   : > { %1350 = vmatpush3.bf16.msra.mxu1 %v1509_v32 }
  0xc5   : > { %1316 = vmatmul.mubr.msk.bf16.vlgmr.msra.gmra.mxu0 %vm565_vm1, %v1498_v6  ;;  %1355 = vmatprep.subr.bf16.mxu1 %v1831_v0 }
  0xc6   : > { %1335 = vmatprep.mubr.msk.bf16.mxu0 %vm1832_vm0, %v1831_v0  ;;  %1320 = vmatpush3.bf16.msra.mxu0 %v1499_v7 }
  0xc7   : > { %1321 = vmatprep.subr.bf16.mxu0 %v1831_v0  ;;  %1352 = vmatmul.mubr.msk.bf16.vlgmr.msra.gmra.mxu1 %vm565_vm1, %v2172_v3 }
  0xc8   : > { %1371 = vmatprep.mubr.msk.bf16.mxu1 %vm1832_vm0, %v1831_v0  ;;  %1356 = vmatpush3.bf16.msra.mxu1 %v1511_v34 }
  0xc9   : > { %1357 = vmatprep.subr.bf16.mxu1 %v1831_v0 }
  0xca   : > { %1322 = vmatpush3.bf16.msra.mxu0 %v1500_v8 }
  0xcb   : > { %1323 = vmatprep.subr.bf16.mxu0 %v1831_v0 }
  0xcc   : > { %1358 = vmatpush3.bf16.msra.mxu1 %v1512_v35 }
  0xcd   : > { %1359 = vmatprep.subr.bf16.mxu1 %v1831_v0 }
  0xce   : > { %1324 = vmatpush3.bf16.msra.mxu0 %v1501_v24 }
  0xcf   : > { %1325 = vmatprep.subr.bf16.mxu0 %v1831_v0 }
  0xd0   : > { %1360 = vmatpush3.bf16.msra.mxu1 %v1513_v36 }
  0xd1   : > { %1361 = vmatprep.subr.bf16.mxu1 %v1831_v0 }
  0xd2   : > { %1326 = vmatpush3.bf16.msra.mxu0 %v1502_v25 }
  0xd3   : > { %1327 = vmatprep.subr.bf16.mxu0 %v1831_v0 }
  0xd4   : > { %1362 = vmatpush3.bf16.msra.mxu1 %v1514_v37 }
  0xd5   : > { %1363 = vmatprep.subr.bf16.mxu1 %v1831_v0 }
  0xd6   : > { %1328 = vmatpush3.bf16.msra.mxu0 %v1504_v27 }
  0xd7   : > { %1329 = vmatprep.subr.bf16.mxu0 %v1831_v0 }
  0xd8   : > { %1364 = vmatpush3.bf16.msra.mxu1 %v1515_v52 }
  0xd9   : > { %1365 = vmatprep.subr.bf16.mxu1 %v1831_v0 }
  0xda   : > { %1330 = vmatpush3.bf16.msra.mxu0 %v1506_v29 }
  0xdb   : > { %1331 = vmatprep.subr.bf16.mxu0 %v1831_v0 }
  0xdc   : > { %1366 = vmatpush3.bf16.msra.mxu1 %v1516_v55 }
  0xdd   : > { %1367 = vmatprep.subr.bf16.mxu1 %v1831_v0 }
  0xde   : > { %1332 = vmatpush3.bf16.msra.mxu0 %v1508_v31 }
  0xdf   : > { %1333 = vmatprep.subr.bf16.mxu0 %v1831_v0 }
  0xe0   : > { %1368 = vmatpush3.bf16.msra.mxu1 %v1517_v57 }
  0xe1   : > { %1369 = vmatprep.subr.bf16.mxu1 %v1831_v0 }
  0xe2   : > { %1334 = vmatpush3.bf16.msra.mxu0 %v1510_v33 }
  0xe4   : > { %1370 = vmatpush3.bf16.msra.mxu1 %v1518_v58 }
 0x17d   : > { %v603_v9 = vpop.f32.mrf.mxu0 }
 0x17f   : > { %v1309_v10 = vpop.f32.mrf.mxu0  ;;  %v855_v47 = vpop.f32.mrf.mxu1 }
 0x181   : > { %v606_v11 = vpop.f32.mrf.mxu0  ;;  %v1345_v48 = vpop.f32.mrf.mxu1 }
 0x183   : > { %v1310_v12 = vpop.f32.mrf.mxu0  ;;  %v858_v49 = vpop.f32.mrf.mxu1 }
 0x185   : > { %v664_v13 = vpop.f32.mrf.mxu0  ;;  %v1346_v50 = vpop.f32.mrf.mxu1 }
 0x186   : > { %v665_v15 = vadd.f32 %v664_v13, %v603_v9  ;;  %v1256_v9 = vld [vmem:[%s2279_s10] ss:$0 sm:$0xff] }
 0x187   : > { %v1317_v16 = vpop.f32.mrf.mxu0  ;;  %v914_v51 = vpop.f32.mrf.mxu1 }
 0x188   : > { %v678_v17 = vadd.f32 %v1240_v14, %v665_v15 }
 0x189   : > { %v667_v18 = vpop.f32.mrf.mxu0  ;;  %v1353_v53 = vpop.f32.mrf.mxu1 }
 0x18a   : > { %v668_v19 = vadd.f32 %v667_v18, %v606_v11  ;;  %v680_v20 = vmul.f32 %v678_v17, %v678_v17 }
 0x18b   : > { %v1318_v21 = vpop.f32.mrf.mxu0  ;;  %v917_v54 = vpop.f32.mrf.mxu1 }
 0x18c   : > { %v679_v22 = vadd.f32 %v1240_v14, %v668_v19  ;;  %682 = vadd.xlane.f32.xlu0 %v680_v20 }
 0x18d   : > { %v1354_v56 = vpop.f32.mrf.mxu1 }
 0x18e   : > { %v681_v23 = vmul.f32 %v679_v22, %v679_v22 }
 0x190   : > { %684 = vadd.xlane.f32.xlu0 %v681_v23 }
 0x215   : > { %v683_v38 = vpop.xlane.xlu0 %682 }
 0x216   : > { %v686_v39 = vmax.f32 %v683_v38, 1e-24 }
 0x218   : > { %1519 = vrsqrt.f32 %v686_v39 }
 0x219   : > { %v685_v40 = vpop.xlane.xlu0 %684 }
 0x21a   : > { %v687_v41 = vmax.f32 %v685_v40, 1e-24 }
 0x21c   : > { %1521 = vrsqrt.f32 %v687_v41 }
 0x225   : > { %v1520_v42 = vpop.eup %1519 }
 0x226   : > { %v690_v44 = vmul.f32 %v1520_v42, %v678_v17 }
 0x229   : > { %v1522_v43 = vpop.eup %1521 }
 0x22a   : > { %v691_v45 = vmul.f32 %v1522_v43, %v679_v22 }
 0x22c   : > { %v692_v46 = vpack.c.bf16 %v691_v45, %v690_v44 }
 0x22e   : > { %1336 = vmatmul.mubr.bf16.vlgmr.msra.gmra.mxu0 %v692_v46 }
 0x2ee   : > { %v798_v60 = vpop.f32.mrf.mxu0 }
 0x2ef   : > { %v799_v61 = vadd.f32 %v1241_v59, %v798_v60 }
 0x2f0   : > { %v1337_v62 = vpop.f32.mrf.mxu0 }
 0x2f1   : > { %v862_v63 = vadd.f32 %v855_v47, %v799_v61 }
 0x2f2   : > { %v801_v1 = vpop.f32.mrf.mxu0 }
 0x2f3   : > { %v802_v2 = vadd.f32 %v1241_v59, %v801_v1  ;;  %v921_v4 = vadd.f32 %v914_v51, %v862_v63 }
 0x2f4   : > { %v1338_v3 = vpop.f32.mrf.mxu0 }
 0x2f5   : > { %v863_v5 = vadd.f32 %v858_v49, %v802_v2  ;;  %v923_v7 = vmax.f32 %v921_v4, 0.0 }
 0x2f7   : > { %v922_v6 = vadd.f32 %v917_v54, %v863_v5 }
 0x2f9   : > { %v924_v0 = vmax.f32 %v922_v6, 0.0 }
 0x2fb   : > { %v925_v8 = vpack.c.bf16 %v924_v0, %v923_v7 }
 0x2fd   : > { %1372 = vmatmul.mubr.bf16.vlgmr.msra.gmra.mxu1 %v925_v8 }
 0x3bd   : > { %v1031_v10 = vpop.f32.mrf.mxu1 }
 0x3be   : > { %v1032_v11 = vadd.f32 %v1256_v9, %v1031_v10 }
 0x3bf   : > { %v1373_v12 = vpop.f32.mrf.mxu1 }
 0x3c0   : > { %1038 = vst [vmem:[%s531_s2] sm:$0xff] %v1032_v11 }
 0x3c1   : > { %v1034_v13 = vpop.f32.mrf.mxu1 }
 0x3c2   : > { %v1035_v14 = vadd.f32 %v1256_v9, %v1034_v13 }
 0x3c3   : > { %v1374_v15 = vpop.f32.mrf.mxu1 }
 0x3c4   : > { %1039 = vst [vmem:[%s531_s2 + $0x8] sm:$0xff] %v1035_v14 }
 0x3c5   : > { %1748 = shalt.err (!%p1745_p7)
}
 0x3c6   : > { %s1749_s16 = scalar_lea.hbm %s2226_s21, 256  ;;  %s1753_s26 = scalar_lea.hbm %s2280_s11, 512 }
 0x3c7   : > { %p1750_p6 = scmp.ne.s32.totalorder %s2226_s21, %s1749_s16  ;;  %p1754_p10 = scmp.lt.s32.totalorder %s2226_s21, %s2280_s11 }
 0x3c8   : > { %p1755_p11 = scmp.lt.s32.totalorder %s1753_s26, %s1749_s16 }
 0x3c9   : > { %p1751_p0 = pnand %p1750_p6, %p2322_p9 }
 0x3ca   : > { %p1756_p13 = por %p1755_p11, %p1754_p10 }
 0x3cb   : > { %p1752_p8 = pneg %p1751_p0 }
 0x3cd   : > { %p1757_p5 = pnand %p1756_p13, %p1752_p8 }
 0x3cf   : > { %1760 = shalt.err (!%p1757_p5)
}
 0x3d0   : > { %s1834_s12 = smov 128   ;;  %s1835_s2 = smov 8  }
 0x3d1   : > { %1403 = dma.vmem_to_hbm [thread:$0]  (%p2322_p9), %s2221_s9, 256, %s2226_s21, %s1041_s15, %s1834_s12, %s1834_s12, %s1835_s2  }
 0x3d2 PF: > { %s1069_s14 = sand.u32 1, %s1807_s17   ;;  %p2323_p1 = scmp.ne.s32.totalorder %s2308_s29, 0 }
 0x3d3   : > { %p2324_p4 = scmp.ge.s32.totalorder %s1819_s20, 2  ;;  %s1070_s5 = scalar_lea.sflag [#allocation4], %s1069_s14 }
 0x3d5   : > { %p1432_p12 = pnand %p2324_p4, %p2323_p1 }
 0x3d7   : > { %p1433_p2 = pneg %p1432_p12 }
 0x3d9   : > { %1802 = dma.done.wait (%p1433_p2), %s1070_s5, 256  }
 0x3da   : > { %1804 = vsyncadd (%p1433_p2), %s1070_s5, 4294967040  ;;  %s2325_s22 = sld [smem:[#allocation24_spill]]  ;;  %p30_p3 = scmp.ge.s32.totalorder %s2017_s30, 4  }
 0x3db   : > { %s2326_s17 = smov %s1811_s18  ;;  %s2327_s18 = smov %s1815_s19 }
 0x3dc   : > { %s2329_s20 = smov %s2017_s30  ;;  %32 = sbr.rel (!%p30_p3) target bundleno = 18 (0x12), region = 146 }
 0x3e0   : > { %s2328_s19 = smov %s2325_s22 }
 0x3e1   :  { %1075 = vsyncpa [#allocation3], 1 }
 0x3e2   :  { %1077 = vsyncpa [#allocation3 + $0x1], 1 }
 0x3e3   :  { %1078 = vsyncpa [#allocation6], 1 }
 0x3e4   :  { %1080 = vsyncpa [#allocation6 + $0x1], 1 }
 0x3e5   :  { %1081 = vsyncpa [#allocation9], 1 }
 0x3e6   :  { %1082 = vsyncpa [#allocation12], 1 }
 0x3e7   :  { %1083 = vsyncpa [#allocation15], 1 }
 0x3e8   :  { %1084 = vsyncpa [#allocation4], 1 }
 0x3e9   :  { %1086 = vsyncpa [#allocation4 + $0x1], 1 }

</bundles_post_ra>
